<compile_context>
chip_gen: v5e
topology: v5e:2x2
jax: 0.10.0
libtpu: 0.0.40
codegen_flags: <defaults>
</compile_context>

<pallas_src>
import functools

import numpy as np

import jax
import jax.numpy as jnp
from jax.experimental import pallas as pl
from jax.experimental.pallas import tpu as pltpu  # noqa: F401  (TPU backend)


def _round_up(n, m):
    return ((n + m - 1) // m) * m


# ---------------------------------------------------------------------------
# Fused Pallas kernel (whole LeNet forward)
# ---------------------------------------------------------------------------
def _fused_lenet_kernel(xq_ref, w_ref, b_ref, out_ref, *, batch, ra, offs):
    B = batch
    bf16 = jnp.bfloat16
    dot = functools.partial(jnp.dot, preferred_element_type=jnp.float32)

    def w(name):                              # bf16 weight tile from the slab
        off, r, c = offs[name]
        return w_ref[off:off + r, 0:c]

    def bias(i, c):                           # f32 (1, c) bias row
        return b_ref[i:i + 1, 0:c]

    # ---- Stage A: conv1 (1x1, 1->6) + tanh + 2x2 avg-pool -----------------
    # xq rows = (tap d, h, b), each tap block padded to `ra` rows.  One
    # matmul / bias / tanh; pool1 is a sum of four tile-aligned row slices.
    z = jnp.tanh(dot(xq_ref[...], w("w1e")) + bias(0, 84))       # (4*ra, 84) f32
    y2 = 0.25 * (z[0:ra] + z[ra:2 * ra] + z[2 * ra:3 * ra] + z[3 * ra:4 * ra])
    # y2: rows (h, b) [first 14*B rows valid], lanes (w*6 + c)

    # ---- Stage B: conv2 (5x5, 6->16) + bias + tanh ------------------------
    # Vertical tap shift kh is a static row slice (rows are (h, b) ordered);
    # M_kh folds the horizontal tap shift and the conv2 weights.
    acc = None
    for kh in range(5):
        t = dot(y2[kh * B:(kh + 10) * B, :].astype(bf16), w("m%d" % kh))
        acc = t if acc is None else acc + t                      # (10B, 160)
    h2 = jnp.tanh(acc + bias(1, 160))         # rows (i, b), lanes (j*16 + n)

    # ---- Stage C: 2x2 avg-pool + conv3 (5x5, 16->120) + bias + tanh -------
    q = dot(w("pr"), h2.astype(bf16))                            # (5B, 160), rows (u, b)
    r = dot(q.astype(bf16), w("pc"))                             # (5B, 80),  lanes (v*16+n)
    y3 = None
    for u in range(5):
        t = dot(r[u * B:(u + 1) * B, :].astype(bf16), w("w3_%d" % u))
        y3 = t if y3 is None else y3 + t                         # (B, 120)
    y3 = jnp.tanh(y3 + bias(2, 120))

    # ---- Stage D/E: fc1 + tanh, fc2 ---------------------------------------
    y4 = jnp.tanh(dot(y3.astype(bf16), w("w4")) + bias(3, 84))   # (B, 84)
    out_ref[...] = dot(y4.astype(bf16), w("w5")) + bias(4, 10)   # (B, 10)


# ---------------------------------------------------------------------------
# One-time weight packing (outside jit): ONE bf16 weight slab + ONE f32 bias slab
# ---------------------------------------------------------------------------
def prepack_params(params, batch):
    B = batch
    f32 = np.float32
    w1 = np.asarray(params["w1"], f32).reshape(6)
    b1 = np.asarray(params["b1"], f32)
    w2 = np.asarray(params["w2"], f32)            # (16, 6, 5, 5)   [n, c, kh, kw]
    b2 = np.asarray(params["b2"], f32)
    w3 = np.asarray(params["w3"], f32)            # (120, 16, 5, 5) [m, n, u, v]
    b3 = np.asarray(params["b3"], f32)
    fc1_w = np.asarray(params["fc1_w"], f32)      # (84, 120)
    fc1_b = np.asarray(params["fc1_b"], f32)
    fc2_w = np.asarray(params["fc2_w"], f32)      # (10, 84)
    fc2_b = np.asarray(params["fc2_b"], f32)

    # conv1 lane-expansion: W1E[w, w'*6 + c] = [w == w'] * w1[c]
    w1e = np.kron(np.eye(14, dtype=f32), w1.reshape(1, 6))            # (14, 84)

    # conv2 lane matrices: M_kh[w*6 + c, j*16 + n] = w2[n, c, kh, w - j] (valid taps)
    w_idx = np.arange(14)[:, None]
    j_idx = np.arange(10)[None, :]
    kw = w_idx - j_idx                                                 # (14, 10)
    valid = (kw >= 0) & (kw <= 4)
    kw_c = np.clip(kw, 0, 4)
    m_blocks = []
    for kh in range(5):
        m4 = w2[:, :, kh, :][:, :, kw_c]                               # (16,6,14,10) [n,c,w,j]
        m4 = np.where(valid[None, None], m4, 0.0)
        m_blocks.append(np.transpose(m4, (2, 1, 3, 0)).reshape(84, 160).astype(f32))

    # pool2: row-pooling PR[(u,b),(i,b)] and lane-pooling PC[(j,n),(v,n)] (0.5*0.5 avg)
    pr = np.zeros((5 * B, 10 * B), f32)
    for u in range(5):
        for b in range(B):
            pr[u * B + b, (2 * u) * B + b] = 0.5
            pr[u * B + b, (2 * u + 1) * B + b] = 0.5
    pj = np.zeros((10, 5), f32)
    for v in range(5):
        pj[2 * v, v] = 0.5
        pj[2 * v + 1, v] = 0.5
    pc = np.kron(pj, np.eye(16, dtype=f32))                            # (160, 80)

    # conv3 weight slabs: W3_u[v*16 + n, m] = w3[m, n, u, v]
    w3_blocks = [np.transpose(w3[:, :, u, :], (2, 1, 0)).reshape(80, 120).astype(f32)
                 for u in range(5)]

    w4 = np.ascontiguousarray(fc1_w.T)                                 # (120, 84)
    w5 = np.ascontiguousarray(fc2_w.T)                                 # (84, 10)

    # ---- pack everything into ONE bf16 weight slab (16-row aligned sections)
    sections = ([("w1e", w1e)]
                + [("m%d" % kh, m_blocks[kh]) for kh in range(5)]
                + [("pr", pr), ("pc", pc)]
                + [("w3_%d" % u, w3_blocks[u]) for u in range(5)]
                + [("w4", w4), ("w5", w5)])
    lane_w = max(160, 10 * B)
    offs, blocks, off = {}, [], 0
    for name, mat in sections:
        r, c = mat.shape
        pad_r = _round_up(r, 16)               # bf16 sublane tile is 16 rows
        blk = np.zeros((pad_r, lane_w), f32)
        blk[:r, :c] = mat
        blocks.append(blk)
        offs[name] = (off, r, c)
        off += pad_r
    wslab = jnp.asarray(np.concatenate(blocks, axis=0), jnp.bfloat16)

    # ---- ONE small f32 bias slab (one bias per row) ------------------------
    biases = [np.tile(b1, 14), np.tile(b2, 10), b3, fc1_b, fc2_b]
    bslab_np = np.zeros((8, lane_w), f32)
    for i, bv in enumerate(biases):
        bslab_np[i, :bv.shape[0]] = bv
    bslab = jnp.asarray(bslab_np)

    meta = dict(batch=B, ra=_round_up(14 * B, 8), offs=offs)
    return wslab, bslab, meta


# ---------------------------------------------------------------------------
# Forward wrapper (single pallas_call, 3 input DMAs, everything in VMEM)
# ---------------------------------------------------------------------------
def lenet_forward(x_nchw, wslab, bslab, *, meta):
    B, ra, offs = meta["batch"], meta["ra"], meta["offs"]
    assert x_nchw.shape[0] == B and tuple(x_nchw.shape[1:]) == (1, 28, 28)

    # Space-to-depth on the raw input: stack the four 2x2-pool taps along the
    # ROW axis, each tap block in (h, b) row order, zero-padded to `ra` rows.
    x2 = x_nchw[:, 0].astype(jnp.float32)                          # (B, 28, 28)
    taps = []
    for dh in (0, 1):
        for dw in (0, 1):
            t = jnp.transpose(x2[:, dh::2, dw::2], (1, 0, 2))      # (14, B, 14)
            t = t.reshape(14 * B, 14)
            taps.append(jnp.pad(t, ((0, ra - 14 * B), (0, 0))))
    xq = jnp.concatenate(taps, axis=0).astype(jnp.bfloat16)        # (4*ra, 14)

    kernel = functools.partial(_fused_lenet_kernel, batch=B, ra=ra, offs=offs)
    return pl.pallas_call(
        kernel,
        out_shape=jax.ShapeDtypeStruct((B, 10), jnp.float32),
    )(xq, wslab, bslab)


# ---------------------------------------------------------------------------
# Pure-JAX reference (for correctness check)
# ---------------------------------------------------------------------------
def lenet_reference(x, params):
    def conv(x, w, b):
        y = jax.lax.conv_general_dilated(
            x, w, window_strides=(1, 1), padding="VALID",
            dimension_numbers=("NCHW", "OIHW", "NCHW"))
        return y + b.reshape(1, -1, 1, 1)

    def pool(x):
        B, C, H, W = x.shape
        return x.reshape(B, C, H // 2, 2, W // 2, 2).mean(axis=(3, 5))

    y = jnp.tanh(conv(x, params["w1"], params["b1"]))
    y = pool(y)
    y = jnp.tanh(conv(y, params["w2"], params["b2"]))
    y = pool(y)
    y = jnp.tanh(conv(y, params["w3"], params["b3"]))
    y = y.reshape(y.shape[0], y.shape[1])
    y = jnp.tanh(y @ params["fc1_w"].T + params["fc1_b"])
    y = y @ params["fc2_w"].T + params["fc2_b"]
    return y


# ---------------------------------------------------------------------------
def make_params(key):
    ks = jax.random.split(key, 10)
    n = lambda k, shape, s: (s * jax.random.normal(k, shape, jnp.float32))
    return {
        "w1": n(ks[0], (6, 1, 1, 1), 0.5),
        "b1": n(ks[1], (6,), 0.1),
        "w2": n(ks[2], (16, 6, 5, 5), 0.1),
        "b2": n(ks[3], (16,), 0.1),
        "w3": n(ks[4], (120, 16, 5, 5), 0.05),
        "b3": n(ks[5], (120,), 0.1),
        "fc1_w": n(ks[6], (84, 120), 0.1),
        "fc1_b": n(ks[7], (84,), 0.1),
        "fc2_w": n(ks[8], (10, 84), 0.1),
        "fc2_b": n(ks[9], (10,), 0.1),
    }


if __name__ == "__main__":
    key = jax.random.PRNGKey(0)
    kx, kp = jax.random.split(key)
    # the module's `x.view(x.shape[:2])` forces 28x28 single-channel input
    x = jax.random.normal(kx, (2, 1, 28, 28), jnp.float32)
    params = make_params(kp)

    wslab, bslab, meta = prepack_params(params, batch=x.shape[0])   # once, outside jit
    fwd = jax.jit(functools.partial(lenet_forward, meta=meta))
    out = jax.block_until_ready(fwd(x, wslab, bslab))

    ref = lenet_reference(x, params)
    assert out.shape == (2, 10), out.shape
    # bf16 matmul operands with f32 accumulation -> relaxed tolerance vs f32 ref
    assert jnp.allclose(out, ref, rtol=5e-2, atol=5e-2), (out, ref)

    print("KERNEL_OK")
</pallas_src>

<mosaic_0001>
module attributes {stable_mosaic.version = 11 : i64} {
  func.func @_fused_lenet_kernel(%arg0: memref<128x14xbf16, #tpu.memory_space<vmem>>, %arg1: memref<1296x160xbf16, #tpu.memory_space<vmem>>, %arg2: memref<8x160xf32, #tpu.memory_space<vmem>>, %arg3: memref<2x10xf32, #tpu.memory_space<vmem>>) attributes {dimension_semantics = [], scalar_prefetch = 0 : i64, scratch_operands = 0 : i64, tpu.core_type = #tpu.core_type<tc>} {
    %c0 = arith.constant 0 : index
    %c0_0 = arith.constant 0 : index
    %0 = vector.load %arg0[%c0, %c0_0] : memref<128x14xbf16, #tpu.memory_space<vmem>>, vector<128x14xbf16>
    %c0_1 = arith.constant 0 : index
    %c0_2 = arith.constant 0 : index
    %1 = vector.load %arg1[%c0_1, %c0_2] : memref<1296x160xbf16, #tpu.memory_space<vmem>>, vector<14x84xbf16>
    %cst = arith.constant dense<0.000000e+00> : vector<128x84xf32>
    %2 = tpu.matmul %0, %1, %cst {dimension_numbers = #tpu.dot_dimension_numbers<[1], [0], [0], [1], [0, 0, 1, 1], [], []>} : vector<128x14xbf16>, vector<14x84xbf16>, vector<128x84xf32> -> vector<128x84xf32>
    %c0_3 = arith.constant 0 : index
    %c0_4 = arith.constant 0 : index
    %3 = vector.load %arg2[%c0_3, %c0_4] : memref<8x160xf32, #tpu.memory_space<vmem>>, vector<1x84xf32>
    %4 = vector.broadcast %3 : vector<1x84xf32> to vector<128x84xf32>
    %5 = arith.addf %2, %4 : vector<128x84xf32>
    %6 = math.tanh %5 : vector<128x84xf32>
    %7 = vector.extract_strided_slice %6 {offsets = [0, 0], sizes = [32, 84], strides = [1, 1]} : vector<128x84xf32> to vector<32x84xf32>
    %8 = vector.extract_strided_slice %6 {offsets = [32, 0], sizes = [32, 84], strides = [1, 1]} : vector<128x84xf32> to vector<32x84xf32>
    %9 = arith.addf %7, %8 : vector<32x84xf32>
    %10 = vector.extract_strided_slice %6 {offsets = [64, 0], sizes = [32, 84], strides = [1, 1]} : vector<128x84xf32> to vector<32x84xf32>
    %11 = arith.addf %9, %10 : vector<32x84xf32>
    %12 = vector.extract_strided_slice %6 {offsets = [96, 0], sizes = [32, 84], strides = [1, 1]} : vector<128x84xf32> to vector<32x84xf32>
    %13 = arith.addf %11, %12 : vector<32x84xf32>
    %cst_5 = arith.constant 2.500000e-01 : f32
    %14 = vector.broadcast %cst_5 : f32 to vector<32x84xf32>
    %15 = arith.mulf %14, %13 : vector<32x84xf32>
    %16 = vector.extract_strided_slice %15 {offsets = [0, 0], sizes = [20, 84], strides = [1, 1]} : vector<32x84xf32> to vector<20x84xf32>
    %17 = arith.truncf %16 : vector<20x84xf32> to vector<20x84xbf16>
    %c16 = arith.constant 16 : index
    %c0_6 = arith.constant 0 : index
    %18 = vector.load %arg1[%c16, %c0_6] : memref<1296x160xbf16, #tpu.memory_space<vmem>>, vector<84x160xbf16>
    %cst_7 = arith.constant dense<0.000000e+00> : vector<20x160xf32>
    %19 = tpu.matmul %17, %18, %cst_7 {dimension_numbers = #tpu.dot_dimension_numbers<[1], [0], [0], [1], [0, 0, 1, 1], [], []>} : vector<20x84xbf16>, vector<84x160xbf16>, vector<20x160xf32> -> vector<20x160xf32>
    %20 = vector.extract_strided_slice %15 {offsets = [2, 0], sizes = [20, 84], strides = [1, 1]} : vector<32x84xf32> to vector<20x84xf32>
    %21 = arith.truncf %20 : vector<20x84xf32> to vector<20x84xbf16>
    %c112 = arith.constant 112 : index
    %c0_8 = arith.constant 0 : index
    %22 = vector.load %arg1[%c112, %c0_8] : memref<1296x160xbf16, #tpu.memory_space<vmem>>, vector<84x160xbf16>
    %cst_9 = arith.constant dense<0.000000e+00> : vector<20x160xf32>
    %23 = tpu.matmul %21, %22, %cst_9 {dimension_numbers = #tpu.dot_dimension_numbers<[1], [0], [0], [1], [0, 0, 1, 1], [], []>} : vector<20x84xbf16>, vector<84x160xbf16>, vector<20x160xf32> -> vector<20x160xf32>
    %24 = arith.addf %19, %23 : vector<20x160xf32>
    %25 = vector.extract_strided_slice %15 {offsets = [4, 0], sizes = [20, 84], strides = [1, 1]} : vector<32x84xf32> to vector<20x84xf32>
    %26 = arith.truncf %25 : vector<20x84xf32> to vector<20x84xbf16>
    %c208 = arith.constant 208 : index
    %c0_10 = arith.constant 0 : index
    %27 = vector.load %arg1[%c208, %c0_10] : memref<1296x160xbf16, #tpu.memory_space<vmem>>, vector<84x160xbf16>
    %cst_11 = arith.constant dense<0.000000e+00> : vector<20x160xf32>
    %28 = tpu.matmul %26, %27, %cst_11 {dimension_numbers = #tpu.dot_dimension_numbers<[1], [0], [0], [1], [0, 0, 1, 1], [], []>} : vector<20x84xbf16>, vector<84x160xbf16>, vector<20x160xf32> -> vector<20x160xf32>
    %29 = arith.addf %24, %28 : vector<20x160xf32>
    %30 = vector.extract_strided_slice %15 {offsets = [6, 0], sizes = [20, 84], strides = [1, 1]} : vector<32x84xf32> to vector<20x84xf32>
    %31 = arith.truncf %30 : vector<20x84xf32> to vector<20x84xbf16>
    %c304 = arith.constant 304 : index
    %c0_12 = arith.constant 0 : index
    %32 = vector.load %arg1[%c304, %c0_12] : memref<1296x160xbf16, #tpu.memory_space<vmem>>, vector<84x160xbf16>
    %cst_13 = arith.constant dense<0.000000e+00> : vector<20x160xf32>
    %33 = tpu.matmul %31, %32, %cst_13 {dimension_numbers = #tpu.dot_dimension_numbers<[1], [0], [0], [1], [0, 0, 1, 1], [], []>} : vector<20x84xbf16>, vector<84x160xbf16>, vector<20x160xf32> -> vector<20x160xf32>
    %34 = arith.addf %29, %33 : vector<20x160xf32>
    %35 = vector.extract_strided_slice %15 {offsets = [8, 0], sizes = [20, 84], strides = [1, 1]} : vector<32x84xf32> to vector<20x84xf32>
    %36 = arith.truncf %35 : vector<20x84xf32> to vector<20x84xbf16>
    %c400 = arith.constant 400 : index
    %c0_14 = arith.constant 0 : index
    %37 = vector.load %arg1[%c400, %c0_14] : memref<1296x160xbf16, #tpu.memory_space<vmem>>, vector<84x160xbf16>
    %cst_15 = arith.constant dense<0.000000e+00> : vector<20x160xf32>
    %38 = tpu.matmul %36, %37, %cst_15 {dimension_numbers = #tpu.dot_dimension_numbers<[1], [0], [0], [1], [0, 0, 1, 1], [], []>} : vector<20x84xbf16>, vector<84x160xbf16>, vector<20x160xf32> -> vector<20x160xf32>
    %39 = arith.addf %34, %38 : vector<20x160xf32>
    %c1 = arith.constant 1 : index
    %c0_16 = arith.constant 0 : index
    %40 = vector.load %arg2[%c1, %c0_16] : memref<8x160xf32, #tpu.memory_space<vmem>>, vector<1x160xf32>
    %41 = vector.broadcast %40 : vector<1x160xf32> to vector<20x160xf32>
    %42 = arith.addf %39, %41 : vector<20x160xf32>
    %43 = math.tanh %42 : vector<20x160xf32>
    %c496 = arith.constant 496 : index
    %c0_17 = arith.constant 0 : index
    %44 = vector.load %arg1[%c496, %c0_17] : memref<1296x160xbf16, #tpu.memory_space<vmem>>, vector<10x20xbf16>
    %45 = arith.truncf %43 : vector<20x160xf32> to vector<20x160xbf16>
    %cst_18 = arith.constant dense<0.000000e+00> : vector<10x160xf32>
    %46 = tpu.matmul %44, %45, %cst_18 {dimension_numbers = #tpu.dot_dimension_numbers<[1], [0], [0], [1], [0, 0, 1, 1], [], []>} : vector<10x20xbf16>, vector<20x160xbf16>, vector<10x160xf32> -> vector<10x160xf32>
    %47 = arith.truncf %46 : vector<10x160xf32> to vector<10x160xbf16>
    %c512 = arith.constant 512 : index
    %c0_19 = arith.constant 0 : index
    %48 = vector.load %arg1[%c512, %c0_19] : memref<1296x160xbf16, #tpu.memory_space<vmem>>, vector<160x80xbf16>
    %cst_20 = arith.constant dense<0.000000e+00> : vector<10x80xf32>
    %49 = tpu.matmul %47, %48, %cst_20 {dimension_numbers = #tpu.dot_dimension_numbers<[1], [0], [0], [1], [0, 0, 1, 1], [], []>} : vector<10x160xbf16>, vector<160x80xbf16>, vector<10x80xf32> -> vector<10x80xf32>
    %50 = vector.extract_strided_slice %49 {offsets = [0, 0], sizes = [2, 80], strides = [1, 1]} : vector<10x80xf32> to vector<2x80xf32>
    %51 = arith.truncf %50 : vector<2x80xf32> to vector<2x80xbf16>
    %c672 = arith.constant 672 : index
    %c0_21 = arith.constant 0 : index
    %52 = vector.load %arg1[%c672, %c0_21] : memref<1296x160xbf16, #tpu.memory_space<vmem>>, vector<80x120xbf16>
    %cst_22 = arith.constant dense<0.000000e+00> : vector<2x120xf32>
    %53 = tpu.matmul %51, %52, %cst_22 {dimension_numbers = #tpu.dot_dimension_numbers<[1], [0], [0], [1], [0, 0, 1, 1], [], []>} : vector<2x80xbf16>, vector<80x120xbf16>, vector<2x120xf32> -> vector<2x120xf32>
    %54 = vector.extract_strided_slice %49 {offsets = [2, 0], sizes = [2, 80], strides = [1, 1]} : vector<10x80xf32> to vector<2x80xf32>
    %55 = arith.truncf %54 : vector<2x80xf32> to vector<2x80xbf16>
    %c752 = arith.constant 752 : index
    %c0_23 = arith.constant 0 : index
    %56 = vector.load %arg1[%c752, %c0_23] : memref<1296x160xbf16, #tpu.memory_space<vmem>>, vector<80x120xbf16>
    %cst_24 = arith.constant dense<0.000000e+00> : vector<2x120xf32>
    %57 = tpu.matmul %55, %56, %cst_24 {dimension_numbers = #tpu.dot_dimension_numbers<[1], [0], [0], [1], [0, 0, 1, 1], [], []>} : vector<2x80xbf16>, vector<80x120xbf16>, vector<2x120xf32> -> vector<2x120xf32>
    %58 = arith.addf %53, %57 : vector<2x120xf32>
    %59 = vector.extract_strided_slice %49 {offsets = [4, 0], sizes = [2, 80], strides = [1, 1]} : vector<10x80xf32> to vector<2x80xf32>
    %60 = arith.truncf %59 : vector<2x80xf32> to vector<2x80xbf16>
    %c832 = arith.constant 832 : index
    %c0_25 = arith.constant 0 : index
    %61 = vector.load %arg1[%c832, %c0_25] : memref<1296x160xbf16, #tpu.memory_space<vmem>>, vector<80x120xbf16>
    %cst_26 = arith.constant dense<0.000000e+00> : vector<2x120xf32>
    %62 = tpu.matmul %60, %61, %cst_26 {dimension_numbers = #tpu.dot_dimension_numbers<[1], [0], [0], [1], [0, 0, 1, 1], [], []>} : vector<2x80xbf16>, vector<80x120xbf16>, vector<2x120xf32> -> vector<2x120xf32>
    %63 = arith.addf %58, %62 : vector<2x120xf32>
    %64 = vector.extract_strided_slice %49 {offsets = [6, 0], sizes = [2, 80], strides = [1, 1]} : vector<10x80xf32> to vector<2x80xf32>
    %65 = arith.truncf %64 : vector<2x80xf32> to vector<2x80xbf16>
    %c912 = arith.constant 912 : index
    %c0_27 = arith.constant 0 : index
    %66 = vector.load %arg1[%c912, %c0_27] : memref<1296x160xbf16, #tpu.memory_space<vmem>>, vector<80x120xbf16>
    %cst_28 = arith.constant dense<0.000000e+00> : vector<2x120xf32>
    %67 = tpu.matmul %65, %66, %cst_28 {dimension_numbers = #tpu.dot_dimension_numbers<[1], [0], [0], [1], [0, 0, 1, 1], [], []>} : vector<2x80xbf16>, vector<80x120xbf16>, vector<2x120xf32> -> vector<2x120xf32>
    %68 = arith.addf %63, %67 : vector<2x120xf32>
    %69 = vector.extract_strided_slice %49 {offsets = [8, 0], sizes = [2, 80], strides = [1, 1]} : vector<10x80xf32> to vector<2x80xf32>
    %70 = arith.truncf %69 : vector<2x80xf32> to vector<2x80xbf16>
    %c992 = arith.constant 992 : index
    %c0_29 = arith.constant 0 : index
    %71 = vector.load %arg1[%c992, %c0_29] : memref<1296x160xbf16, #tpu.memory_space<vmem>>, vector<80x120xbf16>
    %cst_30 = arith.constant dense<0.000000e+00> : vector<2x120xf32>
    %72 = tpu.matmul %70, %71, %cst_30 {dimension_numbers = #tpu.dot_dimension_numbers<[1], [0], [0], [1], [0, 0, 1, 1], [], []>} : vector<2x80xbf16>, vector<80x120xbf16>, vector<2x120xf32> -> vector<2x120xf32>
    %73 = arith.addf %68, %72 : vector<2x120xf32>
    %c2 = arith.constant 2 : index
    %c0_31 = arith.constant 0 : index
    %74 = vector.load %arg2[%c2, %c0_31] : memref<8x160xf32, #tpu.memory_space<vmem>>, vector<1x120xf32>
    %75 = vector.broadcast %74 : vector<1x120xf32> to vector<2x120xf32>
    %76 = arith.addf %73, %75 : vector<2x120xf32>
    %77 = math.tanh %76 : vector<2x120xf32>
    %78 = arith.truncf %77 : vector<2x120xf32> to vector<2x120xbf16>
    %c1072 = arith.constant 1072 : index
    %c0_32 = arith.constant 0 : index
    %79 = vector.load %arg1[%c1072, %c0_32] : memref<1296x160xbf16, #tpu.memory_space<vmem>>, vector<120x84xbf16>
    %cst_33 = arith.constant dense<0.000000e+00> : vector<2x84xf32>
    %80 = tpu.matmul %78, %79, %cst_33 {dimension_numbers = #tpu.dot_dimension_numbers<[1], [0], [0], [1], [0, 0, 1, 1], [], []>} : vector<2x120xbf16>, vector<120x84xbf16>, vector<2x84xf32> -> vector<2x84xf32>
    %c3 = arith.constant 3 : index
    %c0_34 = arith.constant 0 : index
    %81 = vector.load %arg2[%c3, %c0_34] : memref<8x160xf32, #tpu.memory_space<vmem>>, vector<1x84xf32>
    %82 = vector.broadcast %81 : vector<1x84xf32> to vector<2x84xf32>
    %83 = arith.addf %80, %82 : vector<2x84xf32>
    %84 = math.tanh %83 : vector<2x84xf32>
    %85 = arith.truncf %84 : vector<2x84xf32> to vector<2x84xbf16>
    %c1200 = arith.constant 1200 : index
    %c0_35 = arith.constant 0 : index
    %86 = vector.load %arg1[%c1200, %c0_35] : memref<1296x160xbf16, #tpu.memory_space<vmem>>, vector<84x10xbf16>
    %cst_36 = arith.constant dense<0.000000e+00> : vector<2x10xf32>
    %87 = tpu.matmul %85, %86, %cst_36 {dimension_numbers = #tpu.dot_dimension_numbers<[1], [0], [0], [1], [0, 0, 1, 1], [], []>} : vector<2x84xbf16>, vector<84x10xbf16>, vector<2x10xf32> -> vector<2x10xf32>
    %c4 = arith.constant 4 : index
    %c0_37 = arith.constant 0 : index
    %88 = vector.load %arg2[%c4, %c0_37] : memref<8x160xf32, #tpu.memory_space<vmem>>, vector<1x10xf32>
    %89 = vector.broadcast %88 : vector<1x10xf32> to vector<2x10xf32>
    %90 = arith.addf %87, %89 : vector<2x10xf32>
    %c0_38 = arith.constant 0 : index
    %c0_39 = arith.constant 0 : index
    %91 = vector.load %arg3[%c0_38, %c0_39] : memref<2x10xf32, #tpu.memory_space<vmem>>, vector<2x10xf32>
    tpu.vector_store %arg3[%c0_38, %c0_39], %90 {strides = array<i32>} : memref<2x10xf32, #tpu.memory_space<vmem>>, vector<2x10xf32>,
    return
  }
}

</mosaic_0001>

<bundles_post_ra>
// kernel: lenet_forward.1
= control target key start
LH: loop header
LB: loop body
LE: loop exit
PB: predicated region body
PF: predicated region fallthrough
CT: control target
= control target key end

     0   :  { %vm105_vm0 = vcmask 1046528   ;;  %s2907_s0 = inlined_call_operand.vmem [shape: bf16[128,14], index: 0, kind: input, shape index: {}]   ;;  %s2908_s1 = inlined_call_operand.vmem [shape: bf16[1296,160], index: 1, kind: input, shape index: {}]   ;;  %s2909_s2 = inlined_call_operand.vmem [shape: f32[8,160], index: 2, kind: input, shape index: {}]   ;;  %s2910_s3 = inlined_call_operand.hbm [shape: f32[2,10], index: 3, kind: output, shape index: {}]  }
   0x1   :  { %v1476_v0 = vld [vmem:[%s2908_s1] sm:$0xf]  ;;  %v1917_v1 = vld [vmem:[%s2908_s1 + $0x4] sm:$0x70] }
   0x2   :  { %v1477_v2 = vor.u32 %v1917_v1, %v1476_v0 }
   0x3   :  { %8 = vsyncpa [#allocation3], 0  ;;  %v1909_v4 = vld [vmem:[%s2907_s0] sm:$0xff]  ;;  %vm80_vm1 = vcmask 113664   ;;  %v1910_v5 = vld [vmem:[%s2907_s0 + $0x8] sm:$0xff]  ;;  %vm282_vm2 = vcmask 1041408  }
   0x4   :  { %v107_v3 = vsel %vm105_vm0, %v1477_v2, 0  ;;  %v1911_v6 = vld [vmem:[%s2907_s0 + $0x10] sm:$0xff]  ;;  %v1912_v7 = vld [vmem:[%s2907_s0 + $0x18] sm:$0xff]  ;;  %v1913_v8 = vld [vmem:[%s2907_s0 + $0x20] sm:$0xff]  ;;  %vm275_vm3 = vcmask 687104   ;;  %vm439_vm4 = vcmask 1045504  }
   0x5   :  { %116 = vmatpush.bf16.msra.mxu0 %v107_v3  ;;  %v1914_v9 = vld [vmem:[%s2907_s0 + $0x28] sm:$0xff]  ;;  %v1915_v10 = vld [vmem:[%s2907_s0 + $0x30] sm:$0xff]  ;;  %v1916_v11 = vld [vmem:[%s2907_s0 + $0x38] sm:$0xff]  ;;  %vm565_vm5 = vcmask 1044480   ;;  %vm830_vm6 = vcmask 162816   ;;  %vm950_vm7 = vcmask 261120  }
   0x6   :  { %v2150_v16 = vld [vmem:[%s2909_s2] ss:$0 sm:$0xff]  ;;  %v1564_v36 = vld [vmem:[%s2908_s1 + $0x50] sm:$0xf]  ;;  %v1927_v37 = vld [vmem:[%s2908_s1 + $0x54] sm:$0xf0] }
   0x7   :  { %v2165_v28 = vld [vmem:[%s2908_s1 + $0x60] sm:$0x33]  ;;  %v1565_v38 = vor.u32 %v1927_v37, %v1564_v36  ;;  %v1925_v40 = vld [vmem:[%s2908_s1 + $0x44] sm:$0xf0]  ;;  %v1548_v48 = vld [vmem:[%s2908_s1 + $0x30] sm:$0xf] }
   0x8   :  { %1478 = vmatmul.msk.bf16.vlgmr.msra.gmra.mxu0 %vm80_vm1, %v1909_v4  ;;  %v356_v29 = vunpack.c.l.b16 %v2165_v28  ;;  %v1556_v39 = vld [vmem:[%s2908_s1 + $0x40] sm:$0xf]  ;;  %v1923_v49 = vld [vmem:[%s2908_s1 + $0x34] sm:$0xf0]  ;;  %v1520_v53 = vld [vmem:[%s2908_s1 + $0xb0] sm:$0xf] }
   0x9   :  { %v213_v41 = vld [vmem:[%s2908_s1 + $0xc0] sm:$0x33]  ;;  %v1557_v42 = vor.u32 %v1925_v40, %v1556_v39  ;;  %v1549_v52 = vor.u32 %v1923_v49, %v1548_v48  ;;  %v1937_v54 = vld [vmem:[%s2908_s1 + $0xb4] sm:$0xf0]  ;;  %v1936_v55 = vld [vmem:[%s2908_s1 + $0xb4] sm:$0xf] }
   0xa   :  { %v368_v30 = vpack.c.b16 %v356_v29, %v356_v29  ;;  %v251_v43 = vunpack.c.l.b16 %v213_v41  ;;  %v252_v44 = vunpack.c.h.b16 %v213_v41  ;;  %v1521_v56 = vor.u32 %v1937_v54, %v1520_v53  ;;  %v1522_v57 = vld [vmem:[%s2908_s1 + $0xb8] sm:$0xf0]  ;;  %v1540_v58 = vld [vmem:[%s2908_s1 + $0x20] sm:$0xf]  ;;  %v1921_v59 = vld [vmem:[%s2908_s1 + $0x24] sm:$0xf0] }
   0xb   :  { %v1525_v60 = vor.u32 %v1936_v55, %v1522_v57  ;;  %v1541_v61 = vor.u32 %v1921_v59, %v1540_v58  ;;  %v1512_v63 = vld [vmem:[%s2908_s1 + $0xa0] sm:$0xf]  ;;  %v1935_v0 = vld [vmem:[%s2908_s1 + $0xa4] sm:$0xf0]  ;;  %v1934_v1 = vld [vmem:[%s2908_s1 + $0xa4] sm:$0xf] }
   0xc   :  { %v387_v33 = vsel %vm282_vm2, %v368_v30, 0  ;;  %v263_v46 = vpack.c.b16 %v251_v43, %v251_v43  ;;  %v264_v47 = vpack.c.b16 %v252_v44, %v252_v44  ;;  %v1513_v2 = vor.u32 %v1935_v0, %v1512_v63  ;;  %v1514_v3 = vld [vmem:[%s2908_s1 + $0xa8] sm:$0xf0]  ;;  %v1532_v4 = vld [vmem:[%s2908_s1 + $0x10] sm:$0xf]  ;;  %s2091_s28 = smov [#allocation2]  }
   0xd   :  { %394 = vmatpush.bf16.msra.mxu3 %v387_v33  ;;  %v438_v29 = vld [vmem:[%s2908_s1 + $0x120] sm:$0x33]  ;;  %v1929_v33 = vld [vmem:[%s2908_s1 + $0x74] sm:$0xf0]  ;;  %v1490_v37 = vld [vmem:[%s2908_s1 + $0x78] sm:$0xf0] }
   0xe   :  { %v284_v50 = vsel %vm282_vm2, %v263_v46, 0  ;;  %v287_v51 = vsel %vm282_vm2, %v264_v47, 0  ;;  %v475_v30 = vunpack.c.h.b16 %v438_v29  ;;  %v1942_v55 = vld [vmem:[%s2908_s1 + $0xf4] sm:$0xf]  ;;  %v1608_v63 = vld [vmem:[%s2908_s1 + $0x110] sm:$0xf] }
   0xf   :  { %291 = vmatpush.bf16.msra.mxu1 %v284_v50  ;;  %309 = vmatpush.bf16.msra.mxu2 %v287_v51  ;;  %v357_v51 = vunpack.c.h.b16 %v2165_v28  ;;  %v1926_v57 = vld [vmem:[%s2908_s1 + $0x54] sm:$0xf]  ;;  %v1947_v0 = vld [vmem:[%s2908_s1 + $0x114] sm:$0xf0]  ;;  %vm1035_vm8 = vcmask 654336   ;;  %vm1341_vm9 = vcmask 1043456  }
  0x10   :  { %vm1337_vm10 = vcmask 982016   ;;  %s1433_s4 = sshll.u32 %s2910_s3, 4  ;;  %vm1424_vm11 = vcmask 74752   ;;  %s1434_s4 = int_to_ptr.hbm [resolvable:$true] %s1433_s4 }
  0x11   :  { %395 = vmatpush.bf16.msra.mxu3 %v1565_v38  ;;  %v487_v38 = vpack.c.b16 %v475_v30, %v475_v30  ;;  %v369_v59 = vpack.c.b16 %v357_v51, %v357_v51  ;;  %v1945_v30 = vld [vmem:[%s2908_s1 + $0x104] sm:$0xf0] }
  0x13   :  { %292 = vmatpush.bf16.msra.mxu1 %v1521_v56  ;;  %310 = vmatpush.bf16.msra.mxu2 %v1525_v60  ;;  %v508_v43 = vsel %vm282_vm2, %v487_v38, 0  ;;  %v1594_v56 = vld [vmem:[%s2908_s1 + $0xf8] sm:$0xf0]  ;;  %v1922_v38 = vld [vmem:[%s2908_s1 + $0x34] sm:$0xf] }
  0x15   :  { %396 = vmatpush.bf16.msra.mxu3 %v1557_v42 }
  0x17   :  { %293 = vmatpush.bf16.msra.mxu1 %v1513_v2 }
  0x18   :  { %1479 = vmatmul.msk.bf16.gmra.mxu0 %vm80_vm1, %v1910_v5  ;;  %v1919_v5 = vld [vmem:[%s2908_s1 + $0x14] sm:$0xf0] }
  0x19   :  { %397 = vmatpush.bf16.msra.mxu3 %v1549_v52  ;;  %v474_v52 = vunpack.c.l.b16 %v438_v29 }
  0x1b   :  { %v486_v60 = vpack.c.b16 %v474_v52, %v474_v52 }
  0x1d   :  { %398 = vmatpush.bf16.msra.mxu3 %v1541_v61  ;;  %v1566_v61 = vld [vmem:[%s2908_s1 + $0x58] sm:$0xf0] }
  0x28   :  { %1480 = vmatmul.msk.bf16.gmra.mxu0 %vm80_vm1, %v1911_v6  ;;  %v1517_v6 = vor.u32 %v1934_v1, %v1514_v3  ;;  %v1940_v3 = vld [vmem:[%s2908_s1 + $0xe4] sm:$0xf] }
  0x2a   :  { %311 = vmatpush.bf16.msra.mxu2 %v1517_v6 }
  0x38   :  { %1481 = vmatmul.msk.bf16.gmra.mxu0 %vm80_vm1, %v1912_v7  ;;  %v1533_v7 = vor.u32 %v1919_v5, %v1532_v4  ;;  %v1586_v4 = vld [vmem:[%s2908_s1 + $0xe8] sm:$0xf0] }
  0x3a   :  { %399 = vmatpush.bf16.msra.mxu3 %v1533_v7  ;;  %v390_v7 = vsel %vm282_vm2, %v369_v59, 0  ;;  %v1939_v59 = vld [vmem:[%s2908_s1 + $0xd4] sm:$0xf0] }
  0x3e   :  { %530 = vmatpush.bf16.msrb.mxu3 %v508_v43 }
  0x48   :  { %1482 = vmatmul.msk.bf16.gmra.mxu0 %vm80_vm1, %v1913_v8  ;;  %v1504_v8 = vld [vmem:[%s2908_s1 + $0x90] sm:$0xf] }
  0x58   :  { %1483 = vmatmul.msk.bf16.gmra.mxu0 %vm80_vm1, %v1914_v9  ;;  %v1933_v9 = vld [vmem:[%s2908_s1 + $0x94] sm:$0xf0] }
  0x68   :  { %1484 = vmatmul.msk.bf16.gmra.mxu0 %vm80_vm1, %v1915_v10  ;;  %v1932_v10 = vld [vmem:[%s2908_s1 + $0x94] sm:$0xf] }
  0x78   :  { %1485 = vmatmul.msk.bf16.gmra.mxu0 %vm80_vm1, %v1916_v11  ;;  %v1505_v11 = vor.u32 %v1933_v9, %v1504_v8  ;;  %v505_v8 = vsel %vm282_vm2, %v486_v60, 0  ;;  %v2399_v60 = vld [vmem:[%s2908_s1 + $0x1e0] sm:$0x33] }
  0x7a   :  { %294 = vmatpush.bf16.msra.mxu1 %v1505_v11 }
  0x85   :  { %v118_v12 = vpop.f32.mrf.mxu0 }
  0x86   :  { %v119_v17 = vadd.f32 %v118_v12, %v2150_v16  ;;  %v1506_v12 = vld [vmem:[%s2908_s1 + $0x98] sm:$0xf0] }
  0x88   :  { %2017 = vtanh.f32 %v119_v17 }
  0x8d   :  { %v2143_v13 = vpop.f32.mrf.mxu0 }
  0x8e   :  { %v2018_v20 = vpop.eup %2017  ;;  %v121_v39 = vadd.f32 %v2143_v13, %v2150_v16  ;;  %v1946_v13 = vld [vmem:[%s2908_s1 + $0x114] sm:$0xf] }
  0x95   :  { %v2145_v14 = vpop.f32.mrf.mxu0 }
  0x96   :  { %v124_v2 = vadd.f32 %v2145_v14, %v2150_v16  ;;  %v1569_v14 = vor.u32 %v1926_v57, %v1566_v61 }
  0x9d   :  { %v125_v15 = vpop.f32.mrf.mxu0 }
  0x9e   :  { %v126_v25 = vadd.f32 %v125_v15, %v2150_v16  ;;  %v1509_v15 = vor.u32 %v1932_v10, %v1506_v12  ;;  %v1609_v10 = vor.u32 %v1947_v0, %v1608_v63  ;;  %v1589_v12 = vor.u32 %v1940_v3, %v1586_v4 }
  0x9f   :  { %v722_v63 = vunpack.c.l.b16 %v2399_v60 }
  0xa0   :  { %312 = vmatpush.bf16.msra.mxu2 %v1509_v15 }
  0xa5   :  { %v128_v18 = vpop.f32.mrf.mxu0 }
  0xa6   :  { %v129_v19 = vadd.f32 %v128_v18, %v2150_v16 }
  0xa8   :  { %2019 = vtanh.f32 %v129_v19  ;;  %v1496_v19 = vld [vmem:[%s2908_s1 + $0x80] sm:$0xf] }
  0xa9   :  { %2021 = vtanh.f32 %v126_v25 }
  0xad   :  { %v2154_v21 = vpop.f32.mrf.mxu0 }
  0xae   :  { %v2020_v22 = vpop.eup %2019  ;;  %v131_v41 = vadd.f32 %v2154_v21, %v2150_v16  ;;  %v1610_v21 = vld [vmem:[%s2908_s1 + $0x118] sm:$0xf0] }
  0xaf   :  { %v2156_v23 = vadd.f32 %v2020_v22, %v2018_v20  ;;  %v2022_v31 = vpop.eup %2021  ;;  %v1931_v20 = vld [vmem:[%s2908_s1 + $0x84] sm:$0xf0]  ;;  %v1930_v22 = vld [vmem:[%s2908_s1 + $0x84] sm:$0xf] }
  0xb0   :  { %v1497_v25 = vor.u32 %v1931_v20, %v1496_v19 }
  0xb2   :  { %295 = vmatpush.bf16.msra.mxu1 %v1497_v25  ;;  %v1924_v25 = vld [vmem:[%s2908_s1 + $0x44] sm:$0xf] }
  0xb5   :  { %v2158_v24 = vpop.f32.mrf.mxu0 }
  0xb6   :  { %v134_v53 = vadd.f32 %v2158_v24, %v2150_v16  ;;  %v1597_v24 = vor.u32 %v1942_v55, %v1594_v56  ;;  %v1941_v55 = vld [vmem:[%s2908_s1 + $0xe4] sm:$0xf0]  ;;  %v1918_v56 = vld [vmem:[%s2908_s1 + $0x14] sm:$0xf] }
  0xbd   :  { %v135_v26 = vpop.f32.mrf.mxu0 }
  0xbe   :  { %v136_v27 = vadd.f32 %v135_v26, %v2150_v16  ;;  %v1498_v26 = vld [vmem:[%s2908_s1 + $0x88] sm:$0xf0] }
  0xc0   :  { %2023 = vtanh.f32 %v136_v27  ;;  %v1501_v27 = vor.u32 %v1930_v22, %v1498_v26  ;;  %v1558_v26 = vld [vmem:[%s2908_s1 + $0x48] sm:$0xf0] }
  0xc1   :  { %v1561_v29 = vor.u32 %v1924_v25, %v1558_v26 }
  0xc2   :  { %313 = vmatpush.bf16.msra.mxu2 %v1501_v27 }
  0xc5   :  { %v2168_v32 = vpop.f32.mrf.mxu0 }
  0xc6   :  { %v2024_v34 = vpop.eup %2023  ;;  %v139_v46 = vadd.f32 %v2168_v32, %v2150_v16  ;;  %v1613_v32 = vor.u32 %v1946_v13, %v1610_v21 }
  0xc7   :  { %v2171_v35 = vadd.f32 %v2024_v34, %v2022_v31  ;;  %v1488_v31 = vld [vmem:[%s2908_s1 + $0x70] sm:$0xf]  ;;  %v1928_v34 = vld [vmem:[%s2908_s1 + $0x74] sm:$0xf] }
  0xc8   :  { %v1489_v36 = vor.u32 %v1929_v33, %v1488_v31  ;;  %v1493_v40 = vor.u32 %v1928_v34, %v1490_v37  ;;  %531 = vmatpush.bf16.msrb.mxu3 %v1613_v32  ;;  %v1938_v31 = vld [vmem:[%s2908_s1 + $0xd4] sm:$0xf]  ;;  %v1578_v33 = vld [vmem:[%s2908_s1 + $0xd8] sm:$0xf0] }
  0xc9   :  { %v1581_v37 = vor.u32 %v1938_v31, %v1578_v33 }
  0xca   :  { %296 = vmatpush.bf16.msra.mxu1 %v1489_v36  ;;  %314 = vmatpush.bf16.msra.mxu2 %v1493_v40  ;;  %v1592_v40 = vld [vmem:[%s2908_s1 + $0xf0] sm:$0xf] }
  0xcd   :  { %v2188_v45 = vpop.f32.mrf.mxu0 }
  0xce   :  { %v141_v47 = vadd.f32 %v2188_v45, %v2150_v16  ;;  %v1602_v45 = vld [vmem:[%s2908_s1 + $0x108] sm:$0xf0]  ;;  %412 = vmatpush.bf16.msrb.mxu1 %v390_v7  ;;  %512 = vmatpush.bf16.msrb.mxu2 %v505_v8 }
  0xd2   :  { %413 = vmatpush.bf16.msrb.mxu1 %v1569_v14  ;;  %513 = vmatpush.bf16.msrb.mxu2 %v1609_v10 }
  0xd5   :  { %v2216_v62 = vpop.f32.mrf.mxu0 }
  0xd6   :  { %v144_v6 = vadd.f32 %v2216_v62, %v2150_v16  ;;  %414 = vmatpush.bf16.msrb.mxu1 %v1561_v29  ;;  %v1652_v29 = vld [vmem:[%s2908_s1 + $0x170] sm:$0xf] }
  0xdd   :  { %v145_v17 = vpop.f32.mrf.mxu0 }
  0xde   :  { %v146_v18 = vadd.f32 %v145_v17, %v2150_v16 }
  0xe0   :  { %2025 = vtanh.f32 %v146_v18 }
  0xe1   :  { %2027 = vtanh.f32 %v121_v39  ;;  %v1550_v39 = vld [vmem:[%s2908_s1 + $0x38] sm:$0xf0] }
  0xe2   :  { %2029 = vtanh.f32 %v131_v41 }
  0xe3   :  { %2031 = vtanh.f32 %v139_v46  ;;  %v1943_v46 = vld [vmem:[%s2908_s1 + $0xf4] sm:$0xf0] }
  0xe4   :  { %2033 = vtanh.f32 %v141_v47  ;;  %v1593_v13 = vor.u32 %v1943_v46, %v1592_v40 }
  0xe5   :  { %v148_v42 = vpop.f32.mrf.mxu0 }
  0xe6   :  { %v2026_v44 = vpop.eup %2025  ;;  %v149_v49 = vadd.f32 %v148_v42, %v2150_v16 }
  0xe7   :  { %v2286_v48 = vadd.f32 %v2026_v44, %v2171_v35  ;;  %v1944_v35 = vld [vmem:[%s2908_s1 + $0x104] sm:$0xf]  ;;  %v2028_v58 = vpop.eup %2027  ;;  %v1553_v44 = vor.u32 %v1922_v38, %v1550_v39  ;;  %v1672_v38 = vld [vmem:[%s2908_s1 + $0x1a0] sm:$0xf]  ;;  %v1961_v39 = vld [vmem:[%s2908_s1 + $0x1a4] sm:$0xf0] }
  0xe8   :  { %2035 = vtanh.f32 %v149_v49  ;;  %v1605_v50 = vor.u32 %v1944_v35, %v1602_v45  ;;  %v2030_v1 = vpop.eup %2029  ;;  %v1920_v45 = vld [vmem:[%s2908_s1 + $0x24] sm:$0xf] }
  0xe9   :  { %v2032_v5 = vpop.eup %2031  ;;  %v175_v15 = vadd.f32 %v2030_v1, %v2028_v58  ;;  %415 = vmatpush.bf16.msrb.mxu1 %v1553_v44 }
  0xea   :  { %532 = vmatpush.bf16.msrb.mxu3 %v1605_v50  ;;  %v2034_v9 = vpop.eup %2033  ;;  %v178_v17 = vadd.f32 %v2032_v5, %v2156_v23  ;;  %v1600_v23 = vld [vmem:[%s2908_s1 + $0x100] sm:$0xf]  ;;  %v1542_v50 = vld [vmem:[%s2908_s1 + $0x28] sm:$0xf0] }
  0xeb   :  { %v179_v62 = vadd.f32 %v2034_v9, %v175_v15  ;;  %v1601_v36 = vor.u32 %v1945_v30, %v1600_v23  ;;  %v1967_v15 = vld [vmem:[%s2908_s1 + $0x1d4] sm:$0xf0]  ;;  %v1680_v23 = vld [vmem:[%s2908_s1 + $0x1b0] sm:$0xf] }
  0xed   :  { %v150_v54 = vpop.f32.mrf.mxu0  ;;  %514 = vmatpush.bf16.msrb.mxu2 %v1601_v36  ;;  %v1956_v36 = vld [vmem:[%s2908_s1 + $0x174] sm:$0xf] }
  0xee   :  { %v151_v28 = vadd.f32 %v150_v54, %v2150_v16  ;;  %v2036_v11 = vpop.eup %2035  ;;  %533 = vmatpush.bf16.msrb.mxu3 %v1597_v24  ;;  %v1584_v54 = vld [vmem:[%s2908_s1 + $0xe0] sm:$0xf] }
  0xef   :  { %v182_v18 = vadd.f32 %v2036_v11, %v178_v17  ;;  %v1585_v58 = vor.u32 %v1941_v55, %v1584_v54  ;;  %v1636_v55 = vld [vmem:[%s2908_s1 + $0x150] sm:$0xf] }
  0xf0   :  { %2037 = vtanh.f32 %v151_v28  ;;  %v1576_v28 = vld [vmem:[%s2908_s1 + $0xd0] sm:$0xf] }
  0xf1   :  { %2039 = vtanh.f32 %v134_v53  ;;  %v186_v42 = vmul.f32 0.25, %v182_v18  ;;  %515 = vmatpush.bf16.msrb.mxu2 %v1593_v13  ;;  %v1545_v53 = vor.u32 %v1920_v45, %v1542_v50  ;;  %v1577_v0 = vor.u32 %v1939_v59, %v1576_v28  ;;  %v1688_v18 = vld [vmem:[%s2908_s1 + $0x1c0] sm:$0xf]  ;;  %v1646_v50 = vld [vmem:[%s2908_s1 + $0x168] sm:$0xf0] }
  0xf2   :  { %2041 = vtanh.f32 %v124_v2  ;;  %534 = vmatpush.bf16.msrb.mxu3 %v1589_v12  ;;  %v734_v2 = vpack.c.b16 %v722_v63, %v722_v63  ;;  %v1696_v12 = vld [vmem:[%s2908_s1 + $0x1d0] sm:$0xf]  ;;  %v1673_v13 = vor.u32 %v1961_v39, %v1672_v38  ;;  %v1628_v59 = vld [vmem:[%s2908_s1 + $0x140] sm:$0xf] }
  0xf3   :  { %2043 = vtanh.f32 %v144_v6  ;;  %416 = vmatpush.bf16.msrb.mxu1 %v1545_v53  ;;  %v1697_v17 = vor.u32 %v1967_v15, %v1696_v12  ;;  %v1966_v15 = vld [vmem:[%s2908_s1 + $0x1d4] sm:$0xf] }
  0xf4   :  { %v753_v8 = vsel %vm282_vm2, %v734_v2, 0  ;;  %v1620_v2 = vld [vmem:[%s2908_s1 + $0x130] sm:$0xf] }
  0xf5   :  { %v153_v19 = vpop.f32.mrf.mxu0  ;;  %516 = vmatpush.bf16.msrb.mxu2 %v1585_v58 }
  0xf6   :  { %v2038_v20 = vpop.eup %2037  ;;  %v154_v22 = vadd.f32 %v153_v19, %v2150_v16  ;;  %535 = vmatpush.bf16.msrb.mxu3 %v1581_v37  ;;  %v1965_v19 = vld [vmem:[%s2908_s1 + $0x1c4] sm:$0xf0]  ;;  %v1654_v37 = vld [vmem:[%s2908_s1 + $0x178] sm:$0xf0] }
  0xf7   :  { %v183_v27 = vadd.f32 %v2038_v20, %v179_v62  ;;  %v2040_v34 = vpop.eup %2039  ;;  %v563_v20 = vld [vmem:[%s2908_s1 + $0x180] sm:$0x33]  ;;  %v1657_v46 = vor.u32 %v1956_v36, %v1654_v37 }
  0xf8   :  { %2045 = vtanh.f32 %v154_v22  ;;  %v2042_v41 = vpop.eup %2041  ;;  %v1689_v22 = vor.u32 %v1965_v19, %v1688_v18  ;;  %v600_v25 = vunpack.c.l.b16 %v563_v20  ;;  %v601_v26 = vunpack.c.h.b16 %v563_v20  ;;  %v1962_v18 = vld [vmem:[%s2908_s1 + $0x1b4] sm:$0xf] }
  0xf9   :  { %v187_v43 = vmul.f32 0.25, %v183_v27  ;;  %v2044_v47 = vpop.eup %2043  ;;  %v176_v21 = vadd.f32 %v2042_v41, %v2040_v34  ;;  %517 = vmatpush.bf16.msrb.mxu2 %v1577_v0  ;;  %v1963_v27 = vld [vmem:[%s2908_s1 + $0x1b4] sm:$0xf0]  ;;  %v1630_v0 = vld [vmem:[%s2908_s1 + $0x148] sm:$0xf0] }
  0xfa   :  { %v612_v30 = vpack.c.b16 %v600_v25, %v600_v25  ;;  %v613_v31 = vpack.c.b16 %v601_v26, %v601_v26  ;;  %v1681_v33 = vor.u32 %v1963_v27, %v1680_v23  ;;  %v1957_v34 = vld [vmem:[%s2908_s1 + $0x174] sm:$0xf0]  ;;  %v1958_v26 = vld [vmem:[%s2908_s1 + $0x194] sm:$0xf]  ;;  %v1666_v23 = vld [vmem:[%s2908_s1 + $0x198] sm:$0xf0] }
  0xfb   :  { %v2367_v49 = vpack.c.bf16 %v187_v43, %v186_v42  ;;  %v180_v32 = vadd.f32 %v2044_v47, %v176_v21  ;;  %v1653_v44 = vor.u32 %v1957_v34, %v1652_v29  ;;  %v1644_v21 = vld [vmem:[%s2908_s1 + $0x160] sm:$0xf]  ;;  %v1669_v27 = vor.u32 %v1958_v26, %v1666_v23 }
  0xfc   :  { %v631_v42 = vsel %vm282_vm2, %v612_v30, 0 }
  0xfd   :  { %v155_v35 = vpop.f32.mrf.mxu0  ;;  %1570 = vmatmul.msk.bf16.vlgmr.msra.gmra.mxu3 %vm275_vm3, %v2367_v49  ;;  %v217_v4 = vrot.slane %v2367_v49, 1  ;;  %v440_v6 = vrot.slane %v2367_v49, 2  ;;  %v566_v40 = vrot.slane %v2367_v49, 3 }
  0xfe   :  { %v2046_v51 = vpop.eup %2045  ;;  %v156_v52 = vadd.f32 %v155_v35, %v2150_v16  ;;  %v1534_v16 = vld [vmem:[%s2908_s1 + $0x18] sm:$0xf0]  ;;  %760 = vmatpush.bf16.msra.mxu3 %v753_v8  ;;  %v1954_v35 = vld [vmem:[%s2908_s1 + $0x164] sm:$0xf] }
  0xff   :  { %v184_v57 = vadd.f32 %v2046_v51, %v180_v32  ;;  %v1537_v61 = vor.u32 %v1918_v56, %v1534_v16  ;;  %v1955_v32 = vld [vmem:[%s2908_s1 + $0x164] sm:$0xf0]  ;;  %v1664_v51 = vld [vmem:[%s2908_s1 + $0x190] sm:$0xf]  ;;  %v1649_v53 = vor.u32 %v1954_v35, %v1646_v50  ;;  %v1953_v56 = vld [vmem:[%s2908_s1 + $0x154] sm:$0xf0] }
 0x100   :  { %2047 = vtanh.f32 %v156_v52  ;;  %v1645_v45 = vor.u32 %v1955_v32, %v1644_v21  ;;  %v1959_v52 = vld [vmem:[%s2908_s1 + $0x194] sm:$0xf0]  ;;  %v1637_v58 = vor.u32 %v1953_v56, %v1636_v55  ;;  %v1638_v16 = vld [vmem:[%s2908_s1 + $0x158] sm:$0xf0] }
 0x101   :  { %v188_v24 = vmul.f32 0.25, %v184_v57  ;;  %417 = vmatpush.bf16.msrb.mxu1 %v1537_v61  ;;  %v1665_v54 = vor.u32 %v1959_v52, %v1664_v51  ;;  %v1952_v57 = vld [vmem:[%s2908_s1 + $0x154] sm:$0xf]  ;;  %v1950_v61 = vld [vmem:[%s2908_s1 + $0x144] sm:$0xf] }
 0x102   :  { %761 = vmatpush.bf16.msra.mxu3 %v1697_v17  ;;  %v1641_v28 = vor.u32 %v1952_v57, %v1638_v16  ;;  %v1622_v8 = vld [vmem:[%s2908_s1 + $0x138] sm:$0xf0] }
 0x103   :  { %v2402_v1 = vpack.c.bf16 %v188_v24, %v188_v24  ;;  %v2404_v3 = vpack.c.bf16 %v188_v24, %v187_v43  ;;  %v634_v43 = vsel %vm282_vm2, %v613_v31, 0  ;;  %v1698_v17 = vld [vmem:[%s2908_s1 + $0x1d8] sm:$0xf0] }
 0x105   :  { %v218_v5 = vrot.slane %v2402_v1, 1  ;;  %v2410_v7 = vrot.slane %v2402_v1, 2 }
 0x106   :  { %v2048_v9 = vpop.eup %2047  ;;  %762 = vmatpush.bf16.msra.mxu3 %v1689_v22  ;;  %v1674_v22 = vld [vmem:[%s2908_s1 + $0x1a8] sm:$0xf0] }
 0x107   :  { %v185_v14 = vadd.f32 %v2048_v9, %v2286_v48  ;;  %v219_v10 = vsel %vm105_vm0, %v217_v4, %v218_v5  ;;  %v2416_v11 = vsel %vm439_vm4, %v440_v6, %v2410_v7  ;;  %v1949_v4 = vld [vmem:[%s2908_s1 + $0x134] sm:$0xf0]  ;;  %v1948_v6 = vld [vmem:[%s2908_s1 + $0x134] sm:$0xf] }
 0x108   :  { %1526 = vmatmul.msk.bf16.vlgmr.msra.gmra.mxu1 %vm275_vm3, %v219_v10  ;;  %1528 = vmatmul.msk.bf16.vlgmr.msra.gmra.mxu2 %vm275_vm3, %v219_v10  ;;  %v1621_v9 = vor.u32 %v1949_v4, %v1620_v2  ;;  %v723_v10 = vunpack.c.h.b16 %v2399_v60  ;;  %v1964_v60 = vld [vmem:[%s2908_s1 + $0x1c4] sm:$0xf] }
 0x109   :  { %v2426_v62 = vmul.f32 0.25, %v185_v14  ;;  %638 = vmatpush.bf16.msra.mxu1 %v631_v42  ;;  %656 = vmatpush.bf16.msra.mxu2 %v634_v43  ;;  %v1625_v14 = vor.u32 %v1948_v6, %v1622_v8 }
 0x10a   :  { %763 = vmatpush.bf16.msra.mxu3 %v1681_v33  ;;  %v735_v12 = vpack.c.b16 %v723_v10, %v723_v10 }
 0x10b   :  { %v552_v48 = vpack.c.bf16 %v2426_v62, %v188_v24  ;;  %v1951_v24 = vld [vmem:[%s2908_s1 + $0x144] sm:$0xf0]  ;;  %v679_v29 = vpack.c.bf16 %v2426_v62, %v2426_v62 }
 0x10c   :  { %v1629_v63 = vor.u32 %v1951_v24, %v1628_v59 }
 0x10d   :  { %1571 = vmatmul.msk.bf16.gmra.mxu3 %vm275_vm3, %v2402_v1  ;;  %v2465_v41 = vrot.slane %v552_v48, 3  ;;  %639 = vmatpush.bf16.msra.mxu1 %v1653_v44  ;;  %v756_v48 = vsel %vm282_vm2, %v735_v12, 0 }
 0x10e   :  { %657 = vmatpush.bf16.msra.mxu2 %v1657_v46  ;;  %764 = vmatpush.bf16.msra.mxu3 %v1673_v13 }
 0x10f   :  { %v2471_v47 = vsel %vm565_vm5, %v566_v40, %v2465_v41 }
 0x111   :  { %640 = vmatpush.bf16.msra.mxu1 %v1645_v45 }
 0x112   :  { %658 = vmatpush.bf16.msra.mxu2 %v1649_v53  ;;  %765 = vmatpush.bf16.msra.mxu3 %v1665_v54 }
 0x115   :  { %641 = vmatpush.bf16.msra.mxu1 %v1637_v58 }
 0x116   :  { %659 = vmatpush.bf16.msra.mxu2 %v1641_v28 }
 0x118   :  { %1527 = vmatmul.msk.bf16.gmra.mxu1 %vm275_vm3, %v218_v5  ;;  %1529 = vmatmul.msk.bf16.gmra.mxu2 %vm275_vm3, %v218_v5  ;;  %v1633_v5 = vor.u32 %v1950_v61, %v1630_v0 }
 0x119   :  { %642 = vmatpush.bf16.msra.mxu1 %v1629_v63  ;;  %v1706_v63 = vld [vmem:[%s2909_s2 + $0x1] ss:$8 sm:$0x3] }
 0x11a   :  { %660 = vmatpush.bf16.msra.mxu2 %v1633_v5  ;;  %v803_v4 = vperm.slane %v1706_v63, 0 }
 0x11d   :  { %1616 = vmatmul.msk.bf16.vlgmr.msrb.gmra.mxu3 %vm275_vm3, %v2416_v11  ;;  %643 = vmatpush.bf16.msra.mxu1 %v1621_v9 }
 0x11e   :  { %661 = vmatpush.bf16.msra.mxu2 %v1625_v14 }
 0x128   :  { %1572 = vmatmul.msk.bf16.vlgmr.msrb.gmra.mxu1 %vm275_vm3, %v2367_v49  ;;  %1614 = vmatmul.msk.bf16.vlgmr.msrb.gmra.mxu2 %vm275_vm3, %v2416_v11  ;;  %v1701_v49 = vor.u32 %v1966_v15, %v1698_v17  ;;  %v1690_v11 = vld [vmem:[%s2908_s1 + $0x1c8] sm:$0xf0] }
 0x129   :  { %778 = vmatpush.bf16.msrb.mxu1 %v756_v48  ;;  %v1693_v19 = vor.u32 %v1964_v60, %v1690_v11 }
 0x12d   :  { %1617 = vmatmul.msk.bf16.gmra.mxu3 %vm275_vm3, %v2410_v7  ;;  %779 = vmatpush.bf16.msrb.mxu1 %v1701_v49 }
 0x131   :  { %780 = vmatpush.bf16.msrb.mxu1 %v1693_v19 }
 0x138   :  { %1573 = vmatmul.msk.bf16.gmra.mxu1 %vm275_vm3, %v2402_v1  ;;  %1615 = vmatmul.msk.bf16.gmra.mxu2 %vm275_vm3, %v2410_v7  ;;  %v1682_v1 = vld [vmem:[%s2908_s1 + $0x1b8] sm:$0xf0]  ;;  %v1960_v7 = vld [vmem:[%s2908_s1 + $0x1a4] sm:$0xf] }
 0x139   :  { %v1685_v20 = vor.u32 %v1962_v18, %v1682_v1  ;;  %v1677_v25 = vor.u32 %v1960_v7, %v1674_v22 }
 0x13b   :  { %781 = vmatpush.bf16.msrb.mxu1 %v1685_v20 }
 0x13d   :  { %1702 = vmatmul.msk.bf16.vlgmr.msra.gmra.mxu3 %vm275_vm3, %v2404_v3 }
 0x13f   :  { %782 = vmatpush.bf16.msrb.mxu1 %v1677_v25 }
 0x143   :  { %783 = vmatpush.bf16.msrb.mxu1 %v1669_v27 }
 0x148   :  { %1658 = vmatmul.msk.bf16.vlgmr.msra.gmra.mxu1 %vm275_vm3, %v2471_v47  ;;  %1660 = vmatmul.msk.bf16.vlgmr.msra.gmra.mxu2 %vm275_vm3, %v2471_v47 }
 0x14d   :  { %1703 = vmatmul.msk.bf16.gmra.mxu3 %vm275_vm3, %v679_v29 }
 0x158   :  { %1659 = vmatmul.msk.bf16.gmra.mxu1 %vm275_vm3, %v2465_v41  ;;  %1661 = vmatmul.msk.bf16.gmra.mxu2 %vm275_vm3, %v2465_v41 }
 0x168   :  { %1704 = vmatmul.msk.bf16.vlgmr.msrb.gmra.mxu1 %vm275_vm3, %v2404_v3 }
 0x178   :  { %1705 = vmatmul.msk.bf16.gmra.mxu1 %vm275_vm3, %v679_v29 }
 0x180   :  { %v401_v30 = vpop.f32.mrf.mxu3 }
 0x185   :  { %v298_v31 = vpop.f32.mrf.mxu1 }
 0x186   :  { %v402_v33 = vadd.f32 %v401_v30, %v298_v31 }
 0x188   :  { %v403_v34 = vpop.f32.mrf.mxu3 }
 0x18b   :  { %v316_v36 = vpop.f32.mrf.mxu2 }
 0x18d   :  { %v300_v37 = vpop.f32.mrf.mxu1 }
 0x18e   :  { %v404_v62 = vadd.f32 %v403_v34, %v300_v37  ;;  %v1968_v34 = vld [vmem:[%s2908_s1 + $0x1f4] sm:$0x10] }
 0x190   :  { %v406_v38 = vpop.f32.mrf.mxu3 }
 0x193   :  { %v318_v39 = vpop.f32.mrf.mxu2 }
 0x195   :  { %v303_v40 = vpop.f32.mrf.mxu1 }
 0x196   :  { %v407_v15 = vadd.f32 %v406_v38, %v303_v40  ;;  %v1976_v40 = vld [vmem:[%s2908_s1 + $0x274] sm:$0xf0] }
 0x198   :  { %v408_v42 = vpop.f32.mrf.mxu3 }
 0x199   :  { %v1739_v42 = vld [vmem:[%s2908_s1 + $0x260] sm:$0xf] }
 0x19b   :  { %v321_v43 = vpop.f32.mrf.mxu2 }
 0x19d   :  { %v305_v44 = vpop.f32.mrf.mxu1 }
 0x1a0   :  { %v537_v46 = vpop.f32.mrf.mxu3 }
 0x1a3   :  { %v323_v41 = vpop.f32.mrf.mxu2 }
 0x1a5   :  { %v419_v47 = vpop.f32.mrf.mxu1 }
 0x1a6   :  { %v420_v13 = vadd.f32 %v419_v47, %v316_v36 }
 0x1a8   :  { %v539_v3 = vpop.f32.mrf.mxu3  ;;  %v547_v21 = vadd.f32 %v537_v46, %v420_v13  ;;  %v1975_v46 = vld [vmem:[%s2908_s1 + $0x264] sm:$0xf0] }
 0x1ab   :  { %v519_v32 = vpop.f32.mrf.mxu2 }
 0x1ac   :  { %v546_v59 = vadd.f32 %v519_v32, %v402_v33  ;;  %v1709_v33 = vld [vmem:[%s2908_s1 + $0x1f0] sm:$0xf]  ;;  %v1974_v32 = vld [vmem:[%s2908_s1 + $0x254] sm:$0xf0] }
 0x1ad   :  { %v421_v35 = vpop.f32.mrf.mxu1  ;;  %v1710_v38 = vor.u32 %v1968_v34, %v1709_v33  ;;  %v1987_v33 = vld [vmem:[%s2908_s1 + $0x324] sm:$0xf0] }
 0x1ae   :  { %v422_v45 = vadd.f32 %v421_v35, %v318_v39  ;;  %v1743_v39 = vld [vmem:[%s2908_s1 + $0x270] sm:$0xf] }
 0x1af   :  { %v1744_v44 = vor.u32 %v1976_v40, %v1743_v39  ;;  %v1764_v39 = vld [vmem:[%s2908_s1 + $0x310] sm:$0xf]  ;;  %v1986_v40 = vld [vmem:[%s2908_s1 + $0x314] sm:$0xf0] }
 0x1b0   :  { %v542_v50 = vpop.f32.mrf.mxu3  ;;  %v549_v51 = vadd.f32 %v539_v3, %v422_v45  ;;  %v1740_v3 = vor.u32 %v1975_v46, %v1739_v42  ;;  %v1993_v42 = vld [vmem:[%s2908_s1 + $0x384] sm:$0xf0]  ;;  %v1765_v46 = vor.u32 %v1986_v40, %v1764_v39 }
 0x1b1   :  { %954 = vmatpush.bf16.msrb.mxu0 %v1744_v44 }
 0x1b3   :  { %v521_v52 = vpop.f32.mrf.mxu2 }
 0x1b4   :  { %v548_v6 = vadd.f32 %v521_v52, %v404_v62  ;;  %v804_v62 = vperm.slane %v1706_v63, 1  ;;  %v1971_v63 = vld [vmem:[%s2908_s1 + $0x224] sm:$0xf0] }
 0x1b5   :  { %v424_v53 = vpop.f32.mrf.mxu1  ;;  %955 = vmatpush.bf16.msrb.mxu0 %v1740_v3  ;;  %v1985_v3 = vld [vmem:[%s2908_s1 + $0x304] sm:$0xf0] }
 0x1b6   :  { %v425_v54 = vadd.f32 %v424_v53, %v321_v43 }
 0x1b8   :  { %v544_v55 = vpop.f32.mrf.mxu3  ;;  %v2589_v56 = vadd.f32 %v542_v50, %v425_v54  ;;  %v1731_v50 = vld [vmem:[%s2908_s1 + $0x240] sm:$0xf] }
 0x1bb   :  { %v524_v57 = vpop.f32.mrf.mxu2 }
 0x1bc   :  { %v550_v49 = vadd.f32 %v524_v57, %v407_v15 }
 0x1bd   :  { %v426_v58 = vpop.f32.mrf.mxu1 }
 0x1be   :  { %v1727_v58 = vld [vmem:[%s2908_s1 + $0x230] sm:$0xf] }
 0x1c0   :  { %v767_v16 = vpop.f32.mrf.mxu3 }
 0x1c3   :  { %v526_v28 = vpop.f32.mrf.mxu2 }
 0x1c5   :  { %v645_v24 = vpop.f32.mrf.mxu1 }
 0x1c6   :  { %v672_v61 = vadd.f32 %v645_v24, %v546_v59 }
 0x1c8   :  { %v769_v0 = vpop.f32.mrf.mxu3  ;;  %v794_v2 = vadd.f32 %v767_v16, %v672_v61  ;;  %v1972_v16 = vld [vmem:[%s2908_s1 + $0x234] sm:$0xf0] }
 0x1c9   :  { %v1728_v61 = vor.u32 %v1972_v16, %v1727_v58  ;;  %v1802_v58 = vld [vmem:[%s2908_s1 + $0x350] sm:$0xf]  ;;  %v1990_v16 = vld [vmem:[%s2908_s1 + $0x354] sm:$0xf0] }
 0x1ca   :  { %v807_v14 = vadd.f32 %v803_v4, %v794_v2 }
 0x1cb   :  { %v663_v5 = vpop.f32.mrf.mxu2 }
 0x1cc   :  { %2049 = vtanh.f32 %v807_v14  ;;  %v673_v36 = vadd.f32 %v663_v5, %v547_v21  ;;  %v1735_v21 = vld [vmem:[%s2908_s1 + $0x250] sm:$0xf] }
 0x1cd   :  { %v647_v8 = vpop.f32.mrf.mxu1  ;;  %v1736_v45 = vor.u32 %v1974_v32, %v1735_v21 }
 0x1ce   :  { %v674_v9 = vadd.f32 %v647_v8, %v548_v6  ;;  %v1719_v8 = vld [vmem:[%s2908_s1 + $0x210] sm:$0xf] }
 0x1cf   :  { %956 = vmatpush.bf16.msrb.mxu0 %v1736_v45 }
 0x1d0   :  { %v796_v10 = vadd.f32 %v769_v0, %v674_v9  ;;  %v772_v12 = vpop.f32.mrf.mxu3  ;;  %v1970_v9 = vld [vmem:[%s2908_s1 + $0x214] sm:$0xf0] }
 0x1d1   :  { %v1720_v14 = vor.u32 %v1970_v9, %v1719_v8  ;;  %v2003_v8 = vld [vmem:[%s2908_s1 + $0x424] sm:$0xf0]  ;;  %v1798_v9 = vld [vmem:[%s2908_s1 + $0x340] sm:$0xf] }
 0x1d2   :  { %v809_v17 = vadd.f32 %v803_v4, %v796_v10  ;;  %v2050_v1 = vpop.eup %2049  ;;  %v1715_v10 = vld [vmem:[%s2908_s1 + $0x200] sm:$0xf] }
 0x1d3   :  { %v665_v48 = vpop.f32.mrf.mxu2 }
 0x1d4   :  { %2051 = vtanh.f32 %v809_v17  ;;  %v675_v43 = vadd.f32 %v665_v48, %v549_v51  ;;  %v1973_v51 = vld [vmem:[%s2908_s1 + $0x244] sm:$0xf0]  ;;  %v1751_v17 = vld [vmem:[%s2908_s1 + $0x290] sm:$0xf]  ;;  %v1978_v48 = vld [vmem:[%s2908_s1 + $0x294] sm:$0xf0] }
 0x1d5   :  { %v650_v60 = vpop.f32.mrf.mxu1  ;;  %v1732_v55 = vor.u32 %v1973_v51, %v1731_v50  ;;  %v1810_v51 = vld [vmem:[%s2908_s1 + $0x370] sm:$0xf] }
 0x1d6   :  { %v676_v11 = vadd.f32 %v650_v60, %v550_v49  ;;  %v1752_v49 = vor.u32 %v1978_v48, %v1751_v17  ;;  %v1989_v17 = vld [vmem:[%s2908_s1 + $0x344] sm:$0xf0]  ;;  %v1852_v48 = vld [vmem:[%s2908_s1 + $0x410] sm:$0xf] }
 0x1d7   :  { %957 = vmatpush.bf16.msrb.mxu0 %v1732_v55  ;;  %v1991_v55 = vld [vmem:[%s2908_s1 + $0x364] sm:$0xf0] }
 0x1d8   :  { %v798_v18 = vadd.f32 %v772_v12, %v676_v11  ;;  %v774_v19 = vpop.f32.mrf.mxu3  ;;  %v1969_v12 = vld [vmem:[%s2908_s1 + $0x204] sm:$0xf0]  ;;  %v1747_v11 = vld [vmem:[%s2908_s1 + $0x280] sm:$0xf] }
 0x1d9   :  { %v1716_v15 = vor.u32 %v1969_v12, %v1715_v10  ;;  %v1831_v10 = vld [vmem:[%s2908_s1 + $0x3c0] sm:$0xf]  ;;  %v1997_v12 = vld [vmem:[%s2908_s1 + $0x3c4] sm:$0xf0] }
 0x1da   :  { %v2052_v20 = vpop.eup %2051  ;;  %v811_v7 = vadd.f32 %v803_v4, %v798_v18  ;;  %v1977_v18 = vld [vmem:[%s2908_s1 + $0x284] sm:$0xf0] }
 0x1db   :  { %v668_v22 = vpop.f32.mrf.mxu2  ;;  %v821_v25 = vpack.c.bf16 %v2052_v20, %v2050_v1  ;;  %958 = vmatpush.bf16.msrb.mxu0 %v1728_v61  ;;  %v1748_v19 = vor.u32 %v1977_v18, %v1747_v11  ;;  %v1799_v11 = vor.u32 %v1989_v17, %v1798_v9 }
 0x1dc   :  { %2053 = vtanh.f32 %v811_v7  ;;  %v677_v52 = vadd.f32 %v668_v22, %v2589_v56  ;;  %v1723_v56 = vld [vmem:[%s2908_s1 + $0x220] sm:$0xf]  ;;  %v1983_v22 = vld [vmem:[%s2908_s1 + $0x2e4] sm:$0xf0] }
 0x1dd   :  { %v652_v26 = vpop.f32.mrf.mxu1  ;;  %v1724_v2 = vor.u32 %v1971_v63, %v1723_v56  ;;  %v1793_v7 = vld [vmem:[%s2908_s1 + $0x2e0] sm:$0xf]  ;;  %v1835_v56 = vld [vmem:[%s2908_s1 + $0x3d0] sm:$0xf]  ;;  %v1998_v63 = vld [vmem:[%s2908_s1 + $0x3d4] sm:$0xf0] }
 0x1de   :  { %v1794_v26 = vor.u32 %v1983_v22, %v1793_v7  ;;  %v1823_v22 = vld [vmem:[%s2908_s1 + $0x3a0] sm:$0xf] }
 0x1df   :  { %959 = vmatpush.bf16.msrb.mxu0 %v1724_v2  ;;  %v1756_v2 = vld [vmem:[%s2908_s1 + $0x2f0] sm:$0xf] }
 0x1e2   :  { %v2054_v23 = vpop.eup %2053 }
 0x1e3   :  { %v670_v27 = vpop.f32.mrf.mxu2  ;;  %v823_v29 = vpack.c.bf16 %v2054_v23, %v2054_v23  ;;  %960 = vmatpush.bf16.msrb.mxu0 %v1720_v14  ;;  %v1988_v23 = vld [vmem:[%s2908_s1 + $0x334] sm:$0xf0] }
 0x1e4   :  { %v1789_v27 = vld [vmem:[%s2908_s1 + $0x2d0] sm:$0xf] }
 0x1e5   :  { %v785_v30 = vpop.f32.mrf.mxu1  ;;  %v835_v31 = vsel %vm282_vm2, %v823_v29, 0  ;;  %v1982_v29 = vld [vmem:[%s2908_s1 + $0x2d4] sm:$0xf0] }
 0x1e6   :  { %846 = vmatpush.bf16.msrb.mxu2 %v835_v31  ;;  %v795_v37 = vadd.f32 %v785_v30, %v673_v36  ;;  %v1768_v31 = vld [vmem:[%s2908_s1 + $0x320] sm:$0xf]  ;;  %v1790_v34 = vor.u32 %v1982_v29, %v1789_v27  ;;  %v2000_v27 = vld [vmem:[%s2908_s1 + $0x3f4] sm:$0xf0] }
 0x1e7   :  { %961 = vmatpush.bf16.msrb.mxu0 %v1716_v15  ;;  %v1769_v36 = vor.u32 %v1987_v33, %v1768_v31  ;;  %v1832_v15 = vor.u32 %v1997_v12, %v1831_v10  ;;  %v1994_v31 = vld [vmem:[%s2908_s1 + $0x394] sm:$0xf0]  ;;  %v1370_v10 = vld [vmem:[%s2908_s1 + $0x500] sm:$0x3] }
 0x1e8   :  { %v808_v41 = vadd.f32 %v804_v62, %v795_v37  ;;  %v1785_v37 = vld [vmem:[%s2908_s1 + $0x2c0] sm:$0xf]  ;;  %v1393_v12 = vunpack.c.l.b16 %v1370_v10 }
 0x1ea   :  { %847 = vmatpush.bf16.msrb.mxu2 %v821_v25  ;;  %2055 = vtanh.f32 %v808_v41  ;;  %v1772_v25 = vld [vmem:[%s2908_s1 + $0x330] sm:$0xf]  ;;  %v1399_v17 = vpack.c.b16 %v1393_v12, %v1393_v12 }
 0x1eb   :  { %v1773_v30 = vor.u32 %v1988_v23, %v1772_v25  ;;  %v1781_v41 = vld [vmem:[%s2908_s1 + $0x2b0] sm:$0xf]  ;;  %v1995_v25 = vld [vmem:[%s2908_s1 + $0x3a4] sm:$0xf0] }
 0x1ec   :  { %v1844_v23 = vld [vmem:[%s2908_s1 + $0x3f0] sm:$0xf]  ;;  %v1824_v29 = vor.u32 %v1995_v25, %v1823_v22 }
 0x1ed   :  { %v787_v47 = vpop.f32.mrf.mxu1  ;;  %1711 = vmatmul.msk.bf16.vlgmr.msrb.gmra.mxu2 %vm830_vm6, %v1710_v38  ;;  %v1845_v33 = vor.u32 %v2000_v27, %v1844_v23 }
 0x1ee   :  { %v797_v13 = vadd.f32 %v787_v47, %v675_v43  ;;  %974 = vmatpush.bf16.msra.mxu2 %v1752_v49  ;;  %v1980_v47 = vld [vmem:[%s2908_s1 + $0x2b4] sm:$0xf0] }
 0x1ef   :  { %v1782_v21 = vor.u32 %v1980_v47, %v1781_v41  ;;  %v2002_v49 = vld [vmem:[%s2908_s1 + $0x414] sm:$0xf0] }
 0x1f0   :  { %v810_v35 = vadd.f32 %v804_v62, %v797_v13  ;;  %v2056_v57 = vpop.eup %2055  ;;  %v1760_v13 = vld [vmem:[%s2908_s1 + $0x300] sm:$0xf]  ;;  %v1853_v18 = vor.u32 %v2002_v49, %v1852_v48  ;;  %v1906_v48 = vld [vmem:[%s2908_s1 + $0x4f0] sm:$0xf]  ;;  %v2015_v49 = vld [vmem:[%s2908_s1 + $0x4f4] sm:$0xf0] }
 0x1f1   :  { %v1761_v32 = vor.u32 %v1985_v3, %v1760_v13 }
 0x1f2   :  { %2057 = vtanh.f32 %v810_v35  ;;  %975 = vmatpush.bf16.msra.mxu2 %v1748_v19  ;;  %v1996_v19 = vld [vmem:[%s2908_s1 + $0x3b4] sm:$0xf0] }
 0x1f5   :  { %v790_v53 = vpop.f32.mrf.mxu1 }
 0x1f6   :  { %v799_v54 = vadd.f32 %v790_v53, %v677_v52  ;;  %1088 = vmatpush.bf16.msrb.mxu2 %v1794_v26  ;;  %v1992_v52 = vld [vmem:[%s2908_s1 + $0x374] sm:$0xf0] }
 0x1f7   :  { %v1811_v53 = vor.u32 %v1992_v52, %v1810_v51  ;;  %v2010_v51 = vld [vmem:[%s2908_s1 + $0x494] sm:$0xf0] }
 0x1f8   :  { %v2058_v28 = vpop.eup %2057  ;;  %v812_v59 = vadd.f32 %v804_v62, %v799_v54  ;;  %v1981_v62 = vld [vmem:[%s2908_s1 + $0x2c4] sm:$0xf0]  ;;  %v1806_v54 = vld [vmem:[%s2908_s1 + $0x360] sm:$0xf] }
 0x1f9   :  { %v822_v24 = vpack.c.bf16 %v2058_v28, %v2056_v57  ;;  %v1786_v44 = vor.u32 %v1981_v62, %v1785_v37  ;;  %v1807_v57 = vor.u32 %v1991_v55, %v1806_v54  ;;  %v1777_v28 = vld [vmem:[%s2908_s1 + $0x2a0] sm:$0xf]  ;;  %v2009_v54 = vld [vmem:[%s2908_s1 + $0x484] sm:$0xf0] }
 0x1fa   :  { %2059 = vtanh.f32 %v812_v59  ;;  %1089 = vmatpush.bf16.msrb.mxu2 %v1790_v34  ;;  %v1979_v59 = vld [vmem:[%s2908_s1 + $0x2a4] sm:$0xf0]  ;;  %v1840_v34 = vld [vmem:[%s2908_s1 + $0x3e0] sm:$0xf] }
 0x1fb   :  { %v1778_v61 = vor.u32 %v1979_v59, %v1777_v28  ;;  %v1873_v28 = vld [vmem:[%s2908_s1 + $0x460] sm:$0xf]  ;;  %v2007_v59 = vld [vmem:[%s2908_s1 + $0x464] sm:$0xf0] }
 0x1fd   :  { %v792_v0 = vpop.f32.mrf.mxu1 }
 0x1fe   :  { %1090 = vmatpush.bf16.msrb.mxu2 %v1786_v44  ;;  %v1836_v0 = vor.u32 %v1998_v63, %v1835_v56  ;;  %v2006_v56 = vld [vmem:[%s2908_s1 + $0x454] sm:$0xf0] }
 0x200   :  { %v2060_v4 = vpop.eup %2059 }
 0x201   :  { %v824_v5 = vpack.c.bf16 %v2060_v4, %v2060_v4  ;;  %v1984_v4 = vld [vmem:[%s2908_s1 + $0x2f4] sm:$0xf0] }
 0x202   :  { %1091 = vmatpush.bf16.msrb.mxu2 %v1782_v21  ;;  %v1290_v21 = vld [vmem:[%s2908_s1 + $0x4a0] sm:$0xf] }
 0x203   :  { %v838_v6 = vsel %vm282_vm2, %v824_v5, 0  ;;  %v1757_v5 = vor.u32 %v1984_v4, %v1756_v2  ;;  %v2005_v2 = vld [vmem:[%s2908_s1 + $0x444] sm:$0xf0] }
 0x204   :  { %860 = vmatpush.bf16.msrb.mxu3 %v838_v6  ;;  %v1856_v6 = vld [vmem:[%s2908_s1 + $0x420] sm:$0xf] }
 0x205   :  { %v1857_v14 = vor.u32 %v2003_v8, %v1856_v6  ;;  %v1861_v6 = vld [vmem:[%s2908_s1 + $0x430] sm:$0xf]  ;;  %v2004_v8 = vld [vmem:[%s2908_s1 + $0x434] sm:$0xf0] }
 0x206   :  { %1092 = vmatpush.bf16.msrb.mxu2 %v1778_v61  ;;  %v1869_v61 = vld [vmem:[%s2908_s1 + $0x450] sm:$0xf]  ;;  %v1862_v9 = vor.u32 %v2004_v8, %v1861_v6 }
 0x207   :  { %v1870_v63 = vor.u32 %v2006_v56, %v1869_v61 }
 0x208   :  { %861 = vmatpush.bf16.msrb.mxu3 %v822_v24  ;;  %v1803_v24 = vor.u32 %v1990_v16, %v1802_v58  ;;  %v2008_v58 = vld [vmem:[%s2908_s1 + $0x474] sm:$0xf0] }
 0x20b   :  { %1712 = vmatmul.msk.bf16.vlgmr.msrb.gmra.mxu3 %vm830_vm6, %v1710_v38  ;;  %v1814_v38 = vld [vmem:[%s2908_s1 + $0x380] sm:$0xf] }
 0x20c   :  { %1042 = vmatpush.bf16.msra.mxu3 %v1773_v30  ;;  %v1815_v43 = vor.u32 %v1993_v42, %v1814_v38  ;;  %v1819_v30 = vld [vmem:[%s2908_s1 + $0x390] sm:$0xf] }
 0x20d   :  { %v1820_v37 = vor.u32 %v1994_v31, %v1819_v30  ;;  %v1272_v30 = vld [vmem:[%s2909_s2 + $0x2] ss:$0 sm:$0xff] }
 0x20e   :  { %1145 = vmatpush.bf16.msra.mxu1 %v1815_v43 }
 0x210   :  { %1043 = vmatpush.bf16.msra.mxu3 %v1769_v36  ;;  %v1999_v36 = vld [vmem:[%s2908_s1 + $0x3e4] sm:$0xf0] }
 0x211   :  { %v1841_v62 = vor.u32 %v1999_v36, %v1840_v34 }
 0x212   :  { %1146 = vmatpush.bf16.msra.mxu1 %v1811_v53  ;;  %v1881_v53 = vld [vmem:[%s2908_s1 + $0x480] sm:$0xf] }
 0x213   :  { %v1882_v55 = vor.u32 %v2009_v54, %v1881_v53 }
 0x214   :  { %1044 = vmatpush.bf16.msra.mxu3 %v1765_v46 }
 0x216   :  { %1147 = vmatpush.bf16.msra.mxu1 %v1807_v57  ;;  %v1877_v57 = vld [vmem:[%s2908_s1 + $0x470] sm:$0xf] }
 0x217   :  { %v1878_v16 = vor.u32 %v2008_v58, %v1877_v57 }
 0x218   :  { %1045 = vmatpush.bf16.msra.mxu3 %v1761_v32  ;;  %v1321_v32 = vunpack.c.l.b16 %v1290_v21 }
 0x21a   :  { %1148 = vmatpush.bf16.msra.mxu1 %v1803_v24  ;;  %v1874_v24 = vor.u32 %v2007_v59, %v1873_v28 }
 0x21c   :  { %1046 = vmatpush.bf16.msra.mxu3 %v1757_v5 }
 0x21e   :  { %1149 = vmatpush.bf16.msra.mxu1 %v1799_v11  ;;  %v1409_v11 = vsel %vm282_vm2, %v1399_v17, 0 }
 0x220   :  { %1261 = vmatpush.bf16.msrb.mxu3 %v1857_v14 }
 0x222   :  { %1413 = vmatpush.bf16.msrb.mxu1 %v1409_v11 }
 0x224   :  { %1262 = vmatpush.bf16.msrb.mxu3 %v1853_v18  ;;  %v1907_v18 = vor.u32 %v2015_v49, %v1906_v48 }
 0x226   :  { %1414 = vmatpush.bf16.msrb.mxu1 %v1907_v18 }
 0x270   :  { %v849_v60 = vpop.f32.mrf.mxu2 }
 0x278   :  { %v851_v1 = vpop.f32.mrf.mxu2 }
 0x279   :  { %v868_v20 = vpack.c.bf16 %v851_v1, %v849_v60  ;;  %v1827_v60 = vld [vmem:[%s2908_s1 + $0x3b0] sm:$0xf]  ;;  %v1848_v1 = vld [vmem:[%s2908_s1 + $0x400] sm:$0xf] }
 0x27a   :  { %v1828_v7 = vor.u32 %v1996_v19, %v1827_v60  ;;  %v1902_v19 = vld [vmem:[%s2908_s1 + $0x4e0] sm:$0xf] }
 0x27b   :  { %962 = vmatmul.bf16.vlgmr.msrb.gmra.mxu0 %v868_v20  ;;  %v2001_v20 = vld [vmem:[%s2908_s1 + $0x404] sm:$0xf0] }
 0x27c   :  { %v1849_v26 = vor.u32 %v2001_v20, %v1848_v1  ;;  %v2014_v1 = vld [vmem:[%s2908_s1 + $0x4e4] sm:$0xf0] }
 0x27d   :  { %v1903_v22 = vor.u32 %v2014_v1, %v1902_v19 }
 0x27e   :  { %1263 = vmatpush.bf16.msrb.mxu3 %v1849_v26 }
 0x27f   :  { %1415 = vmatpush.bf16.msrb.mxu1 %v1903_v22 }
 0x282   :  { %1264 = vmatpush.bf16.msrb.mxu3 %v1845_v33 }
 0x286   :  { %1265 = vmatpush.bf16.msrb.mxu3 %v1841_v62 }
 0x28e   :  { %v863_v35 = vpop.f32.mrf.mxu3 }
 0x296   :  { %v865_v45 = vpop.f32.mrf.mxu3 }
 0x297   :  { %v869_v50 = vpack.c.bf16 %v865_v45, %v863_v35  ;;  %v1329_v35 = vpack.c.b16 %v1321_v32, %v1321_v32 }
 0x299   :  { %1753 = vmatmul.msk.bf16.vlgmr.msra.gmra.mxu2 %vm950_vm7, %v869_v50  ;;  %v1343_v45 = vsel %vm1341_vm9, %v1329_v35, 0  ;;  %v1885_v50 = vld [vmem:[%s2908_s1 + $0x490] sm:$0xf] }
 0x29a   :  { %1203 = vmatpush.bf16.msra.mxu2 %v1836_v0  ;;  %1345 = vmatpush.bf16.msra.mxu0 %v1343_v45  ;;  %v1886_v52 = vor.u32 %v2010_v51, %v1885_v50  ;;  %v1865_v0 = vld [vmem:[%s2908_s1 + $0x440] sm:$0xf]  ;;  %v1371_v50 = vld [vmem:[%s2909_s2 + $0x4] ss:$0 sm:$0xff] }
 0x29b   :  { %v1866_v4 = vor.u32 %v2005_v2, %v1865_v0 }
 0x29e   :  { %1204 = vmatpush.bf16.msra.mxu2 %v1832_v15  ;;  %1346 = vmatpush.bf16.msra.mxu0 %v1886_v52 }
 0x2a2   :  { %1205 = vmatpush.bf16.msra.mxu2 %v1828_v7  ;;  %1347 = vmatpush.bf16.msra.mxu0 %v1882_v55 }
 0x2a6   :  { %1206 = vmatpush.bf16.msra.mxu2 %v1824_v29  ;;  %1348 = vmatpush.bf16.msra.mxu0 %v1878_v16 }
 0x2aa   :  { %1207 = vmatpush.bf16.msra.mxu2 %v1820_v37  ;;  %1349 = vmatpush.bf16.msra.mxu0 %v1874_v24 }
 0x2ae   :  { %1350 = vmatpush.bf16.msra.mxu0 %v1870_v63 }
 0x2b2   :  { %1351 = vmatpush.bf16.msra.mxu0 %v1866_v4 }
 0x2b6   :  { %1352 = vmatpush.bf16.msra.mxu0 %v1862_v9 }
 0x2f8   :  { %v963_v38 = vpop.f32.mrf.mxu0 }
 0x300   :  { %v965_v41 = vpop.f32.mrf.mxu0 }
 0x31c   :  { %v977_v39 = vpop.f32.mrf.mxu2 }
 0x31d   :  { %v978_v40 = vadd.f32 %v977_v39, %v963_v38  ;;  %v1898_v38 = vld [vmem:[%s2908_s1 + $0x4d0] sm:$0xf]  ;;  %v2013_v39 = vld [vmem:[%s2908_s1 + $0x4d4] sm:$0xf0] }
 0x31f   :  { %v982_v42 = vpack.c.bf16 %v978_v40, %v978_v40  ;;  %v1899_v40 = vor.u32 %v2013_v39, %v1898_v38 }
 0x321   :  { %v1004_v43 = vrot.slane %v982_v42, 1  ;;  %v1108_v44 = vrot.slane %v982_v42, 2  ;;  %1795 = vmatmul.msk.bf16.vlgmr.msrb.gmra.mxu2 %vm1035_vm8, %v982_v42  ;;  %v1166_v13 = vrot.slane %v982_v42, 3  ;;  %1416 = vmatpush.bf16.msrb.mxu1 %v1899_v40  ;;  %v1894_v42 = vld [vmem:[%s2908_s1 + $0x4c0] sm:$0xf] }
 0x323   :  { %1774 = vmatmul.msk.bf16.vlgmr.msra.gmra.mxu3 %vm1035_vm8, %v1004_v43  ;;  %1816 = vmatmul.msk.bf16.vlgmr.msra.gmra.mxu1 %vm1035_vm8, %v1108_v44  ;;  %v2012_v43 = vld [vmem:[%s2908_s1 + $0x4c4] sm:$0xf0] }
 0x324   :  { %v979_v46 = vpop.f32.mrf.mxu2  ;;  %v1895_v44 = vor.u32 %v2012_v43, %v1894_v42 }
 0x325   :  { %v980_v47 = vadd.f32 %v979_v46, %v965_v41  ;;  %v1890_v46 = vld [vmem:[%s2908_s1 + $0x4b0] sm:$0xf]  ;;  %v2011_v41 = vld [vmem:[%s2908_s1 + $0x4b4] sm:$0xf0]  ;;  %s1431_s1 = sshll.u32 %s2091_s28, 4  ;;  %s1432_s1 = int_to_ptr.vmem [resolvable:$true] %s1431_s1 }
 0x326   :  { %1417 = vmatpush.bf16.msrb.mxu1 %v1895_v44 }
 0x327   :  { %v1214_v3 = vpack.c.bf16 %v980_v47, %v980_v47  ;;  %v1891_v47 = vor.u32 %v2011_v41, %v1890_v46 }
 0x32a   :  { %1418 = vmatpush.bf16.msrb.mxu1 %v1891_v47 }
 0x331   :  { %1837 = vmatmul.msk.bf16.vlgmr.msra.gmra.mxu2 %vm1035_vm8, %v1166_v13  ;;  %v1291_v13 = vld [vmem:[%s2909_s2 + $0x3] ss:$0 sm:$0xff] }
 0x333   :  { %1858 = vmatmul.msk.bf16.vlgmr.msrb.gmra.mxu3 %vm1035_vm8, %v1214_v3 }
 0x3a0   :  { %v1151_v5 = vpop.f32.mrf.mxu1 }
 0x3a4   :  { %v1094_v14 = vpop.f32.mrf.mxu2 }
 0x3a6   :  { %v1048_v15 = vpop.f32.mrf.mxu3 }
 0x3a7   :  { %v1095_v25 = vadd.f32 %v1094_v14, %v1048_v15 }
 0x3a8   :  { %v1153_v60 = vpop.f32.mrf.mxu1 }
 0x3a9   :  { %v1155_v26 = vadd.f32 %v1151_v5, %v1095_v25 }
 0x3ac   :  { %v1096_v20 = vpop.f32.mrf.mxu2 }
 0x3ae   :  { %v1050_v7 = vpop.f32.mrf.mxu3 }
 0x3b4   :  { %v1209_v23 = vpop.f32.mrf.mxu2 }
 0x3b5   :  { %v1213_v27 = vadd.f32 %v1209_v23, %v1155_v26 }
 0x3b6   :  { %v1267_v29 = vpop.f32.mrf.mxu3 }
 0x3b7   :  { %v1271_v31 = vadd.f32 %v1267_v29, %v1213_v27 }
 0x3b9   :  { %v1273_v33 = vadd.f32 %v1272_v30, %v1271_v31 }
 0x3bb   :  { %2061 = vtanh.f32 %v1273_v33 }
 0x3bc   :  { %v1211_v34 = vpop.f32.mrf.mxu2 }
 0x3be   :  { %v1269_v36 = vpop.f32.mrf.mxu3 }
 0x3c1   :  { %v2062_v37 = vpop.eup %2061 }
 0x3c2   :  { %v1275_v62 = vpack.c.bf16 %v2062_v37, %v2062_v37 }
 0x3c4   :  { %1887 = vmatmul.msk.bf16.vlgmr.msra.gmra.mxu0 %vm1337_vm10, %v1275_v62 }
 0x441   :  { %v1354_v3 = vpop.f32.mrf.mxu0 }
 0x442   :  { %v1355_v21 = vadd.f32 %v1354_v3, %v1291_v13 }
 0x444   :  { %2063 = vtanh.f32 %v1355_v21 }
 0x449   :  { %v1356_v32 = vpop.f32.mrf.mxu0 }
 0x44a   :  { %v2064_v35 = vpop.eup %2063 }
 0x44b   :  { %v1359_v45 = vpack.c.bf16 %v2064_v35, %v2064_v35 }
 0x44d   :  { %1908 = vmatmul.msk.bf16.vlgmr.msrb.gmra.mxu1 %vm275_vm3, %v1359_v45 }
 0x4ca   :  { %v1420_v51 = vpop.f32.mrf.mxu1 }
 0x4cb   :  { %v1421_v52 = vadd.f32 %v1420_v51, %v1371_v50 }
 0x4cd   :  { %1425 = vst.msk [vmem:[#allocation2] sm:$0x3] %vm1424_vm11, %v1421_v52 }
 0x4ce   :  { %1436 = dma.vmem_to_hbm [thread:$0]  %s1432_s1, 32, %s1434_s4, [#allocation3]  }
 0x4d2   :  { %v1422_v53 = vpop.f32.mrf.mxu1 }
 0x4d3   :  { %2089 = dma.done.wait [#allocation3], 32  }
 0x4d4   :  { %2090 = vsyncadd [#allocation3], 4294967264 }
 0x4d5   :  { %1441 = vsyncpa [#allocation3], 1 }

</bundles_post_ra>
